<compile_context>
chip_gen: v6e
topology: v6e:2x2x1
jax: 0.10.0
libtpu: 0.0.40
codegen_flags: <defaults>
</compile_context>

<pallas_src>
import jax
import jax.numpy as jnp
from jax.experimental import pallas as pl
from jax.experimental.pallas import tpu as pltpu


def _make_lstm_stack_kernel(num_layers, T, B, H, lane_pack):
    """Kernel running `num_layers` stacked LSTM layers over the whole
    (time-major, flattened to (T*B, .)) sequence in one grid invocation."""
    H4 = 4 * H

    def kernel(*refs):
        # refs = [x, (wih, whh, bias) * num_layers, out]
        x_ref = refs[0]
        out_ref = refs[1 + 3 * num_layers]
        wih = [refs[1 + 3 * l] for l in range(num_layers)]    # (D_in, 4H) bf16
        whh = [refs[2 + 3 * l] for l in range(num_layers)]    # (H,    4H) bf16
        bias = [refs[3 + 3 * l] for l in range(num_layers)]   # (1,    4H) f32

        # Layer-0 input projection for ALL timesteps in one big MXU matmul,
        # with the combined bias (b_ih + b_hh) folded in.  f32 accumulate.
        gx_all = jnp.dot(x_ref[...].astype(jnp.bfloat16), wih[0][...],
                         preferred_element_type=jnp.float32) + bias[0][...]
        gx = [gx_all[t * B:(t + 1) * B, :] for t in range(T)]   # T x (B, 4H)

        h_seq = []
        for layer in range(num_layers):
            whh_l = whh[layer][...]                             # (H, 4H) bf16
            has_next = layer + 1 < num_layers
            if has_next:
                wih_n = wih[layer + 1][...]                     # (H, 4H) bf16
                bias_n = bias[layer + 1][...]                   # (1, 4H) f32

            h = jnp.zeros((B, H), dtype=jnp.float32)
            c = jnp.zeros((B, H), dtype=jnp.float32)
            h_seq = []
            gx_next = []

            # Sequential recurrence: only h_{t-1} @ W_hh remains per step.
            # T is small & static -> fully unrolled for scheduler visibility.
            for t in range(T):
                g = gx[t] + jnp.dot(h.astype(jnp.bfloat16), whh_l,
                                    preferred_element_type=jnp.float32)  # (B,4H) f32
                # Merged full-vreg nonlinearities; PyTorch gate order: i, f, g, o.
                s = jax.nn.sigmoid(g)                     # one EUP pass, (B, 4H)
                th = jnp.tanh(g)                          # one EUP pass, (B, 4H)
                i_g = s[:, 0 * H:1 * H]
                f_g = s[:, 1 * H:2 * H]
                g_g = th[:, 2 * H:3 * H]
                o_g = s[:, 3 * H:4 * H]
                c = f_g * c + i_g * g_g
                h = o_g * jnp.tanh(c)
                h_seq.append(h)                           # stays in vregs
                if has_next:
                    # Wavefront: next layer's input projection for step t,
                    # independent MXU work overlapped with this layer's chain.
                    gx_next.append(
                        jnp.dot(h.astype(jnp.bfloat16), wih_n,
                                preferred_element_type=jnp.float32) + bias_n)
            gx = gx_next
            # TODO(synk): nn.LSTM applies inter-layer dropout only in training
            # mode; eval-mode forward (identity) is what is reproduced here.

        # Single lane-dense store of the last layer's outputs.
        if lane_pack > 1:
            rows = []
            for chunk in range(T // lane_pack):
                rows.append(jnp.concatenate(
                    [h_seq[chunk * lane_pack + j] for j in range(lane_pack)],
                    axis=1))                              # (B, lane_pack*H)
            out_val = jnp.concatenate(rows, axis=0)       # (T*B/lane_pack, lp*H)
        else:
            out_val = jnp.concatenate(h_seq, axis=0)      # (T*B, H)
        out_ref[...] = out_val.astype(out_ref.dtype)

    return kernel


def lstm_stack_forward(x_btd, params):
    """Equivalent of Cell.forward: (B, T, D_in) -> (B, T, H), zero (h0, c0)."""
    B, T, D0 = x_btd.shape
    H = params[0][1].shape[1]          # w_hh: (4H, H)
    H4 = 4 * H
    L = len(params)

    # Lane-dense output packing factor (pack `lane_pack` timesteps per row so
    # the store is 128-lane wide); falls back to 1 when shapes don't divide.
    lane_pack = 1
    if H < 128 and 128 % H == 0 and T % (128 // H) == 0:
        lane_pack = 128 // H

    # Layout plumbing in XLA (cheap, one-time): batch-first -> time-major,
    # flattened so the kernel only ever sees 2D operands.
    x_2d = jnp.transpose(x_btd, (1, 0, 2)).reshape(T * B, D0)

    flat_args = [x_2d]
    in_specs = [pl.BlockSpec((T * B, D0), lambda i: (0, 0))]
    for (w_ih, w_hh, b_ih, b_hh) in params:
        d_in = w_ih.shape[1]
        flat_args += [
            jnp.transpose(w_ih).astype(jnp.bfloat16),     # (D_in, 4H) bf16
            jnp.transpose(w_hh).astype(jnp.bfloat16),     # (H,    4H) bf16
            (b_ih + b_hh).reshape(1, H4),                 # (1,    4H) f32 combined
        ]
        in_specs += [
            pl.BlockSpec((d_in, H4), lambda i: (0, 0)),
            pl.BlockSpec((H, H4), lambda i: (0, 0)),
            pl.BlockSpec((1, H4), lambda i: (0, 0)),
        ]

    out_rows = (T * B) // lane_pack
    out_cols = H * lane_pack

    out_2d = pl.pallas_call(
        _make_lstm_stack_kernel(L, T, B, H, lane_pack),
        out_shape=jax.ShapeDtypeStruct((out_rows, out_cols), jnp.float32),
        grid_spec=pltpu.PrefetchScalarGridSpec(
            num_scalar_prefetch=0,
            grid=(1,),                             # whole stack in one invocation
            in_specs=in_specs,
            out_specs=pl.BlockSpec((out_rows, out_cols), lambda i: (0, 0)),
        ),
        compiler_params=pltpu.CompilerParams(
            dimension_semantics=("arbitrary",),    # time recurrence is sequential
        ),
    )(*flat_args)

    # Undo the lane-dense packing (free layout plumbing in the wrapper).
    if lane_pack > 1:
        out = out_2d.reshape(T // lane_pack, B, lane_pack, H)
        out = jnp.transpose(out, (1, 0, 2, 3)).reshape(B, T, H)
    else:
        out = jnp.transpose(out_2d.reshape(T, B, H), (1, 0, 2))
    return out


cell_forward = jax.jit(lstm_stack_forward)


def init_lstm_params(key, input_size, hidden_size, num_layers):
    """Deterministic synthetic params, PyTorch-style shapes/init scale."""
    params = []
    k = 1.0 / jnp.sqrt(jnp.float32(hidden_size))
    for layer in range(num_layers):
        d_in = input_size if layer == 0 else hidden_size
        key, k1, k2, k3, k4 = jax.random.split(key, 5)
        w_ih = jax.random.uniform(k1, (4 * hidden_size, d_in), jnp.float32, -k, k)
        w_hh = jax.random.uniform(k2, (4 * hidden_size, hidden_size), jnp.float32, -k, k)
        b_ih = jax.random.uniform(k3, (4 * hidden_size,), jnp.float32, -k, k)
        b_hh = jax.random.uniform(k4, (4 * hidden_size,), jnp.float32, -k, k)
        params.append((w_ih, w_hh, b_ih, b_hh))
    return params


def lstm_reference(x_btd, params):
    """Pure-JAX (lax.scan) reference matching torch.nn.LSTM eval forward."""
    x = x_btd
    for (w_ih, w_hh, b_ih, b_hh) in params:
        H = w_hh.shape[1]
        Bsz = x.shape[0]

        def step(carry, x_t, w_ih=w_ih, w_hh=w_hh, b_ih=b_ih, b_hh=b_hh, H=H):
            h, c = carry
            g = x_t @ w_ih.T + b_ih + h @ w_hh.T + b_hh
            i = jax.nn.sigmoid(g[:, 0 * H:1 * H])
            f = jax.nn.sigmoid(g[:, 1 * H:2 * H])
            gg = jnp.tanh(g[:, 2 * H:3 * H])
            o = jax.nn.sigmoid(g[:, 3 * H:4 * H])
            c = f * c + i * gg
            h = o * jnp.tanh(c)
            return (h, c), h

        h0 = jnp.zeros((Bsz, H), jnp.float32)
        c0 = jnp.zeros((Bsz, H), jnp.float32)
        _, ys = jax.lax.scan(step, (h0, c0), jnp.swapaxes(x, 0, 1))
        x = jnp.swapaxes(ys, 0, 1)
    return x


if __name__ == "__main__":
    # Shapes consistent with Cell: dimension=4, d_model(hidden)=32,
    # num_layer=2, batch=2, seq=8, unidirectional (D=1).
    batch, seq, dimension, hidden, num_layers = 2, 8, 4, 32, 2

    key = jax.random.PRNGKey(0)
    key, xk, pk = jax.random.split(key, 3)
    x = jax.random.normal(xk, (batch, seq, dimension), dtype=jnp.float32)
    params = init_lstm_params(pk, dimension, hidden, num_layers)

    out = cell_forward(x, params)
    jax.block_until_ready(out)
    assert out.shape == (batch, seq, hidden)

    # bf16 MXU operands -> re-validated against the f32 reference (loose tol).
    ref = lstm_reference(x, params)
    assert jnp.allclose(out, ref, atol=2e-2, rtol=2e-2), float(
        jnp.max(jnp.abs(out - ref)))

    print("KERNEL_OK")
</pallas_src>

<mosaic_0001>
module attributes {stable_mosaic.version = 11 : i64} {
  func.func @kernel(%arg0: i32, %arg1: memref<16x4xf32, #tpu.memory_space<vmem>>, %arg2: memref<4x128xbf16, #tpu.memory_space<vmem>>, %arg3: memref<32x128xbf16, #tpu.memory_space<vmem>>, %arg4: memref<1x128xf32, #tpu.memory_space<vmem>>, %arg5: memref<32x128xbf16, #tpu.memory_space<vmem>>, %arg6: memref<32x128xbf16, #tpu.memory_space<vmem>>, %arg7: memref<1x128xf32, #tpu.memory_space<vmem>>, %arg8: memref<4x128xf32, #tpu.memory_space<vmem>>) attributes {dimension_semantics = [#tpu.dimension_semantics<arbitrary>], iteration_bounds = array<i64: 1>, scalar_prefetch = 0 : i64, scratch_operands = 0 : i64, tpu.core_type = #tpu.core_type<tc>, window_params = [{pipeline_mode = #tpu.pipeline_mode<synchronous>, transform_indices = @transform_0, window_bounds = array<i64: 16, 4>}, {pipeline_mode = #tpu.pipeline_mode<synchronous>, transform_indices = @transform_1, window_bounds = array<i64: 4, 128>}, {pipeline_mode = #tpu.pipeline_mode<synchronous>, transform_indices = @transform_2, window_bounds = array<i64: 32, 128>}, {pipeline_mode = #tpu.pipeline_mode<synchronous>, transform_indices = @transform_3, window_bounds = array<i64: 1, 128>}, {pipeline_mode = #tpu.pipeline_mode<synchronous>, transform_indices = @transform_4, window_bounds = array<i64: 32, 128>}, {pipeline_mode = #tpu.pipeline_mode<synchronous>, transform_indices = @transform_5, window_bounds = array<i64: 32, 128>}, {pipeline_mode = #tpu.pipeline_mode<synchronous>, transform_indices = @transform_6, window_bounds = array<i64: 1, 128>}, {pipeline_mode = #tpu.pipeline_mode<synchronous>, transform_indices = @transform_7, window_bounds = array<i64: 4, 128>}]} {
    %c0 = arith.constant 0 : index
    %c0_0 = arith.constant 0 : index
    %0 = vector.load %arg1[%c0, %c0_0] : memref<16x4xf32, #tpu.memory_space<vmem>>, vector<16x4xf32>
    %1 = arith.truncf %0 : vector<16x4xf32> to vector<16x4xbf16>
    %c0_1 = arith.constant 0 : index
    %c0_2 = arith.constant 0 : index
    %2 = vector.load %arg2[%c0_1, %c0_2] : memref<4x128xbf16, #tpu.memory_space<vmem>>, vector<4x128xbf16>
    %cst = arith.constant dense<0.000000e+00> : vector<16x128xf32>
    %3 = tpu.matmul %1, %2, %cst {dimension_numbers = #tpu.dot_dimension_numbers<[1], [0], [0], [1], [0, 0, 1, 1], [], []>} : vector<16x4xbf16>, vector<4x128xbf16>, vector<16x128xf32> -> vector<16x128xf32>
    %c0_3 = arith.constant 0 : index
    %c0_4 = arith.constant 0 : index
    %4 = vector.load %arg4[%c0_3, %c0_4] : memref<1x128xf32, #tpu.memory_space<vmem>>, vector<1x128xf32>
    %5 = vector.broadcast %4 : vector<1x128xf32> to vector<16x128xf32>
    %6 = arith.addf %3, %5 : vector<16x128xf32>
    %7 = vector.extract_strided_slice %6 {offsets = [0, 0], sizes = [2, 128], strides = [1, 1]} : vector<16x128xf32> to vector<2x128xf32>
    %8 = vector.extract_strided_slice %6 {offsets = [2, 0], sizes = [2, 128], strides = [1, 1]} : vector<16x128xf32> to vector<2x128xf32>
    %9 = vector.extract_strided_slice %6 {offsets = [4, 0], sizes = [2, 128], strides = [1, 1]} : vector<16x128xf32> to vector<2x128xf32>
    %10 = vector.extract_strided_slice %6 {offsets = [6, 0], sizes = [2, 128], strides = [1, 1]} : vector<16x128xf32> to vector<2x128xf32>
    %11 = vector.extract_strided_slice %6 {offsets = [8, 0], sizes = [2, 128], strides = [1, 1]} : vector<16x128xf32> to vector<2x128xf32>
    %12 = vector.extract_strided_slice %6 {offsets = [10, 0], sizes = [2, 128], strides = [1, 1]} : vector<16x128xf32> to vector<2x128xf32>
    %13 = vector.extract_strided_slice %6 {offsets = [12, 0], sizes = [2, 128], strides = [1, 1]} : vector<16x128xf32> to vector<2x128xf32>
    %14 = vector.extract_strided_slice %6 {offsets = [14, 0], sizes = [2, 128], strides = [1, 1]} : vector<16x128xf32> to vector<2x128xf32>
    %c0_5 = arith.constant 0 : index
    %c0_6 = arith.constant 0 : index
    %15 = vector.load %arg3[%c0_5, %c0_6] : memref<32x128xbf16, #tpu.memory_space<vmem>>, vector<32x128xbf16>
    %c0_7 = arith.constant 0 : index
    %c0_8 = arith.constant 0 : index
    %16 = vector.load %arg5[%c0_7, %c0_8] : memref<32x128xbf16, #tpu.memory_space<vmem>>, vector<32x128xbf16>
    %c0_9 = arith.constant 0 : index
    %c0_10 = arith.constant 0 : index
    %17 = vector.load %arg7[%c0_9, %c0_10] : memref<1x128xf32, #tpu.memory_space<vmem>>, vector<1x128xf32>
    %cst_11 = arith.constant 0.000000e+00 : f32
    %18 = vector.broadcast %cst_11 : f32 to vector<2x32xf32>
    %cst_12 = arith.constant 0.000000e+00 : f32
    %19 = vector.broadcast %cst_12 : f32 to vector<2x32xf32>
    %20 = arith.truncf %18 : vector<2x32xf32> to vector<2x32xbf16>
    %cst_13 = arith.constant dense<0.000000e+00> : vector<2x128xf32>
    %21 = tpu.matmul %20, %15, %cst_13 {dimension_numbers = #tpu.dot_dimension_numbers<[1], [0], [0], [1], [0, 0, 1, 1], [], []>} : vector<2x32xbf16>, vector<32x128xbf16>, vector<2x128xf32> -> vector<2x128xf32>
    %22 = arith.addf %7, %21 : vector<2x128xf32>
    %23 = arith.negf %22 : vector<2x128xf32>
    %24 = math.exp %23 : vector<2x128xf32>
    %cst_14 = arith.constant 1.000000e+00 : f32
    %25 = vector.broadcast %cst_14 : f32 to vector<2x128xf32>
    %26 = arith.addf %25, %24 : vector<2x128xf32>
    %27 = arith.divf %25, %26 : vector<2x128xf32>
    %28 = math.tanh %22 : vector<2x128xf32>
    %29 = vector.extract_strided_slice %27 {offsets = [0, 0], sizes = [2, 32], strides = [1, 1]} : vector<2x128xf32> to vector<2x32xf32>
    %30 = vector.extract_strided_slice %27 {offsets = [0, 32], sizes = [2, 32], strides = [1, 1]} : vector<2x128xf32> to vector<2x32xf32>
    %31 = vector.extract_strided_slice %28 {offsets = [0, 64], sizes = [2, 32], strides = [1, 1]} : vector<2x128xf32> to vector<2x32xf32>
    %32 = vector.extract_strided_slice %27 {offsets = [0, 96], sizes = [2, 32], strides = [1, 1]} : vector<2x128xf32> to vector<2x32xf32>
    %33 = arith.mulf %30, %19 : vector<2x32xf32>
    %34 = arith.mulf %29, %31 : vector<2x32xf32>
    %35 = arith.addf %33, %34 : vector<2x32xf32>
    %36 = math.tanh %35 : vector<2x32xf32>
    %37 = arith.mulf %32, %36 : vector<2x32xf32>
    %38 = arith.truncf %37 : vector<2x32xf32> to vector<2x32xbf16>
    %cst_15 = arith.constant dense<0.000000e+00> : vector<2x128xf32>
    %39 = tpu.matmul %38, %16, %cst_15 {dimension_numbers = #tpu.dot_dimension_numbers<[1], [0], [0], [1], [0, 0, 1, 1], [], []>} : vector<2x32xbf16>, vector<32x128xbf16>, vector<2x128xf32> -> vector<2x128xf32>
    %40 = vector.broadcast %17 : vector<1x128xf32> to vector<2x128xf32>
    %41 = arith.addf %39, %40 : vector<2x128xf32>
    %42 = arith.truncf %37 : vector<2x32xf32> to vector<2x32xbf16>
    %cst_16 = arith.constant dense<0.000000e+00> : vector<2x128xf32>
    %43 = tpu.matmul %42, %15, %cst_16 {dimension_numbers = #tpu.dot_dimension_numbers<[1], [0], [0], [1], [0, 0, 1, 1], [], []>} : vector<2x32xbf16>, vector<32x128xbf16>, vector<2x128xf32> -> vector<2x128xf32>
    %44 = arith.addf %8, %43 : vector<2x128xf32>
    %45 = arith.negf %44 : vector<2x128xf32>
    %46 = math.exp %45 : vector<2x128xf32>
    %cst_17 = arith.constant 1.000000e+00 : f32
    %47 = vector.broadcast %cst_17 : f32 to vector<2x128xf32>
    %48 = arith.addf %47, %46 : vector<2x128xf32>
    %49 = arith.divf %47, %48 : vector<2x128xf32>
    %50 = math.tanh %44 : vector<2x128xf32>
    %51 = vector.extract_strided_slice %49 {offsets = [0, 0], sizes = [2, 32], strides = [1, 1]} : vector<2x128xf32> to vector<2x32xf32>
    %52 = vector.extract_strided_slice %49 {offsets = [0, 32], sizes = [2, 32], strides = [1, 1]} : vector<2x128xf32> to vector<2x32xf32>
    %53 = vector.extract_strided_slice %50 {offsets = [0, 64], sizes = [2, 32], strides = [1, 1]} : vector<2x128xf32> to vector<2x32xf32>
    %54 = vector.extract_strided_slice %49 {offsets = [0, 96], sizes = [2, 32], strides = [1, 1]} : vector<2x128xf32> to vector<2x32xf32>
    %55 = arith.mulf %52, %35 : vector<2x32xf32>
    %56 = arith.mulf %51, %53 : vector<2x32xf32>
    %57 = arith.addf %55, %56 : vector<2x32xf32>
    %58 = math.tanh %57 : vector<2x32xf32>
    %59 = arith.mulf %54, %58 : vector<2x32xf32>
    %60 = arith.truncf %59 : vector<2x32xf32> to vector<2x32xbf16>
    %cst_18 = arith.constant dense<0.000000e+00> : vector<2x128xf32>
    %61 = tpu.matmul %60, %16, %cst_18 {dimension_numbers = #tpu.dot_dimension_numbers<[1], [0], [0], [1], [0, 0, 1, 1], [], []>} : vector<2x32xbf16>, vector<32x128xbf16>, vector<2x128xf32> -> vector<2x128xf32>
    %62 = vector.broadcast %17 : vector<1x128xf32> to vector<2x128xf32>
    %63 = arith.addf %61, %62 : vector<2x128xf32>
    %64 = arith.truncf %59 : vector<2x32xf32> to vector<2x32xbf16>
    %cst_19 = arith.constant dense<0.000000e+00> : vector<2x128xf32>
    %65 = tpu.matmul %64, %15, %cst_19 {dimension_numbers = #tpu.dot_dimension_numbers<[1], [0], [0], [1], [0, 0, 1, 1], [], []>} : vector<2x32xbf16>, vector<32x128xbf16>, vector<2x128xf32> -> vector<2x128xf32>
    %66 = arith.addf %9, %65 : vector<2x128xf32>
    %67 = arith.negf %66 : vector<2x128xf32>
    %68 = math.exp %67 : vector<2x128xf32>
    %cst_20 = arith.constant 1.000000e+00 : f32
    %69 = vector.broadcast %cst_20 : f32 to vector<2x128xf32>
    %70 = arith.addf %69, %68 : vector<2x128xf32>
    %71 = arith.divf %69, %70 : vector<2x128xf32>
    %72 = math.tanh %66 : vector<2x128xf32>
    %73 = vector.extract_strided_slice %71 {offsets = [0, 0], sizes = [2, 32], strides = [1, 1]} : vector<2x128xf32> to vector<2x32xf32>
    %74 = vector.extract_strided_slice %71 {offsets = [0, 32], sizes = [2, 32], strides = [1, 1]} : vector<2x128xf32> to vector<2x32xf32>
    %75 = vector.extract_strided_slice %72 {offsets = [0, 64], sizes = [2, 32], strides = [1, 1]} : vector<2x128xf32> to vector<2x32xf32>
    %76 = vector.extract_strided_slice %71 {offsets = [0, 96], sizes = [2, 32], strides = [1, 1]} : vector<2x128xf32> to vector<2x32xf32>
    %77 = arith.mulf %74, %57 : vector<2x32xf32>
    %78 = arith.mulf %73, %75 : vector<2x32xf32>
    %79 = arith.addf %77, %78 : vector<2x32xf32>
    %80 = math.tanh %79 : vector<2x32xf32>
    %81 = arith.mulf %76, %80 : vector<2x32xf32>
    %82 = arith.truncf %81 : vector<2x32xf32> to vector<2x32xbf16>
    %cst_21 = arith.constant dense<0.000000e+00> : vector<2x128xf32>
    %83 = tpu.matmul %82, %16, %cst_21 {dimension_numbers = #tpu.dot_dimension_numbers<[1], [0], [0], [1], [0, 0, 1, 1], [], []>} : vector<2x32xbf16>, vector<32x128xbf16>, vector<2x128xf32> -> vector<2x128xf32>
    %84 = vector.broadcast %17 : vector<1x128xf32> to vector<2x128xf32>
    %85 = arith.addf %83, %84 : vector<2x128xf32>
    %86 = arith.truncf %81 : vector<2x32xf32> to vector<2x32xbf16>
    %cst_22 = arith.constant dense<0.000000e+00> : vector<2x128xf32>
    %87 = tpu.matmul %86, %15, %cst_22 {dimension_numbers = #tpu.dot_dimension_numbers<[1], [0], [0], [1], [0, 0, 1, 1], [], []>} : vector<2x32xbf16>, vector<32x128xbf16>, vector<2x128xf32> -> vector<2x128xf32>
    %88 = arith.addf %10, %87 : vector<2x128xf32>
    %89 = arith.negf %88 : vector<2x128xf32>
    %90 = math.exp %89 : vector<2x128xf32>
    %cst_23 = arith.constant 1.000000e+00 : f32
    %91 = vector.broadcast %cst_23 : f32 to vector<2x128xf32>
    %92 = arith.addf %91, %90 : vector<2x128xf32>
    %93 = arith.divf %91, %92 : vector<2x128xf32>
    %94 = math.tanh %88 : vector<2x128xf32>
    %95 = vector.extract_strided_slice %93 {offsets = [0, 0], sizes = [2, 32], strides = [1, 1]} : vector<2x128xf32> to vector<2x32xf32>
    %96 = vector.extract_strided_slice %93 {offsets = [0, 32], sizes = [2, 32], strides = [1, 1]} : vector<2x128xf32> to vector<2x32xf32>
    %97 = vector.extract_strided_slice %94 {offsets = [0, 64], sizes = [2, 32], strides = [1, 1]} : vector<2x128xf32> to vector<2x32xf32>
    %98 = vector.extract_strided_slice %93 {offsets = [0, 96], sizes = [2, 32], strides = [1, 1]} : vector<2x128xf32> to vector<2x32xf32>
    %99 = arith.mulf %96, %79 : vector<2x32xf32>
    %100 = arith.mulf %95, %97 : vector<2x32xf32>
    %101 = arith.addf %99, %100 : vector<2x32xf32>
    %102 = math.tanh %101 : vector<2x32xf32>
    %103 = arith.mulf %98, %102 : vector<2x32xf32>
    %104 = arith.truncf %103 : vector<2x32xf32> to vector<2x32xbf16>
    %cst_24 = arith.constant dense<0.000000e+00> : vector<2x128xf32>
    %105 = tpu.matmul %104, %16, %cst_24 {dimension_numbers = #tpu.dot_dimension_numbers<[1], [0], [0], [1], [0, 0, 1, 1], [], []>} : vector<2x32xbf16>, vector<32x128xbf16>, vector<2x128xf32> -> vector<2x128xf32>
    %106 = vector.broadcast %17 : vector<1x128xf32> to vector<2x128xf32>
    %107 = arith.addf %105, %106 : vector<2x128xf32>
    %108 = arith.truncf %103 : vector<2x32xf32> to vector<2x32xbf16>
    %cst_25 = arith.constant dense<0.000000e+00> : vector<2x128xf32>
    %109 = tpu.matmul %108, %15, %cst_25 {dimension_numbers = #tpu.dot_dimension_numbers<[1], [0], [0], [1], [0, 0, 1, 1], [], []>} : vector<2x32xbf16>, vector<32x128xbf16>, vector<2x128xf32> -> vector<2x128xf32>
    %110 = arith.addf %11, %109 : vector<2x128xf32>
    %111 = arith.negf %110 : vector<2x128xf32>
    %112 = math.exp %111 : vector<2x128xf32>
    %cst_26 = arith.constant 1.000000e+00 : f32
    %113 = vector.broadcast %cst_26 : f32 to vector<2x128xf32>
    %114 = arith.addf %113, %112 : vector<2x128xf32>
    %115 = arith.divf %113, %114 : vector<2x128xf32>
    %116 = math.tanh %110 : vector<2x128xf32>
    %117 = vector.extract_strided_slice %115 {offsets = [0, 0], sizes = [2, 32], strides = [1, 1]} : vector<2x128xf32> to vector<2x32xf32>
    %118 = vector.extract_strided_slice %115 {offsets = [0, 32], sizes = [2, 32], strides = [1, 1]} : vector<2x128xf32> to vector<2x32xf32>
    %119 = vector.extract_strided_slice %116 {offsets = [0, 64], sizes = [2, 32], strides = [1, 1]} : vector<2x128xf32> to vector<2x32xf32>
    %120 = vector.extract_strided_slice %115 {offsets = [0, 96], sizes = [2, 32], strides = [1, 1]} : vector<2x128xf32> to vector<2x32xf32>
    %121 = arith.mulf %118, %101 : vector<2x32xf32>
    %122 = arith.mulf %117, %119 : vector<2x32xf32>
    %123 = arith.addf %121, %122 : vector<2x32xf32>
    %124 = math.tanh %123 : vector<2x32xf32>
    %125 = arith.mulf %120, %124 : vector<2x32xf32>
    %126 = arith.truncf %125 : vector<2x32xf32> to vector<2x32xbf16>
    %cst_27 = arith.constant dense<0.000000e+00> : vector<2x128xf32>
    %127 = tpu.matmul %126, %16, %cst_27 {dimension_numbers = #tpu.dot_dimension_numbers<[1], [0], [0], [1], [0, 0, 1, 1], [], []>} : vector<2x32xbf16>, vector<32x128xbf16>, vector<2x128xf32> -> vector<2x128xf32>
    %128 = vector.broadcast %17 : vector<1x128xf32> to vector<2x128xf32>
    %129 = arith.addf %127, %128 : vector<2x128xf32>
    %130 = arith.truncf %125 : vector<2x32xf32> to vector<2x32xbf16>
    %cst_28 = arith.constant dense<0.000000e+00> : vector<2x128xf32>
    %131 = tpu.matmul %130, %15, %cst_28 {dimension_numbers = #tpu.dot_dimension_numbers<[1], [0], [0], [1], [0, 0, 1, 1], [], []>} : vector<2x32xbf16>, vector<32x128xbf16>, vector<2x128xf32> -> vector<2x128xf32>
    %132 = arith.addf %12, %131 : vector<2x128xf32>
    %133 = arith.negf %132 : vector<2x128xf32>
    %134 = math.exp %133 : vector<2x128xf32>
    %cst_29 = arith.constant 1.000000e+00 : f32
    %135 = vector.broadcast %cst_29 : f32 to vector<2x128xf32>
    %136 = arith.addf %135, %134 : vector<2x128xf32>
    %137 = arith.divf %135, %136 : vector<2x128xf32>
    %138 = math.tanh %132 : vector<2x128xf32>
    %139 = vector.extract_strided_slice %137 {offsets = [0, 0], sizes = [2, 32], strides = [1, 1]} : vector<2x128xf32> to vector<2x32xf32>
    %140 = vector.extract_strided_slice %137 {offsets = [0, 32], sizes = [2, 32], strides = [1, 1]} : vector<2x128xf32> to vector<2x32xf32>
    %141 = vector.extract_strided_slice %138 {offsets = [0, 64], sizes = [2, 32], strides = [1, 1]} : vector<2x128xf32> to vector<2x32xf32>
    %142 = vector.extract_strided_slice %137 {offsets = [0, 96], sizes = [2, 32], strides = [1, 1]} : vector<2x128xf32> to vector<2x32xf32>
    %143 = arith.mulf %140, %123 : vector<2x32xf32>
    %144 = arith.mulf %139, %141 : vector<2x32xf32>
    %145 = arith.addf %143, %144 : vector<2x32xf32>
    %146 = math.tanh %145 : vector<2x32xf32>
    %147 = arith.mulf %142, %146 : vector<2x32xf32>
    %148 = arith.truncf %147 : vector<2x32xf32> to vector<2x32xbf16>
    %cst_30 = arith.constant dense<0.000000e+00> : vector<2x128xf32>
    %149 = tpu.matmul %148, %16, %cst_30 {dimension_numbers = #tpu.dot_dimension_numbers<[1], [0], [0], [1], [0, 0, 1, 1], [], []>} : vector<2x32xbf16>, vector<32x128xbf16>, vector<2x128xf32> -> vector<2x128xf32>
    %150 = vector.broadcast %17 : vector<1x128xf32> to vector<2x128xf32>
    %151 = arith.addf %149, %150 : vector<2x128xf32>
    %152 = arith.truncf %147 : vector<2x32xf32> to vector<2x32xbf16>
    %cst_31 = arith.constant dense<0.000000e+00> : vector<2x128xf32>
    %153 = tpu.matmul %152, %15, %cst_31 {dimension_numbers = #tpu.dot_dimension_numbers<[1], [0], [0], [1], [0, 0, 1, 1], [], []>} : vector<2x32xbf16>, vector<32x128xbf16>, vector<2x128xf32> -> vector<2x128xf32>
    %154 = arith.addf %13, %153 : vector<2x128xf32>
    %155 = arith.negf %154 : vector<2x128xf32>
    %156 = math.exp %155 : vector<2x128xf32>
    %cst_32 = arith.constant 1.000000e+00 : f32
    %157 = vector.broadcast %cst_32 : f32 to vector<2x128xf32>
    %158 = arith.addf %157, %156 : vector<2x128xf32>
    %159 = arith.divf %157, %158 : vector<2x128xf32>
    %160 = math.tanh %154 : vector<2x128xf32>
    %161 = vector.extract_strided_slice %159 {offsets = [0, 0], sizes = [2, 32], strides = [1, 1]} : vector<2x128xf32> to vector<2x32xf32>
    %162 = vector.extract_strided_slice %159 {offsets = [0, 32], sizes = [2, 32], strides = [1, 1]} : vector<2x128xf32> to vector<2x32xf32>
    %163 = vector.extract_strided_slice %160 {offsets = [0, 64], sizes = [2, 32], strides = [1, 1]} : vector<2x128xf32> to vector<2x32xf32>
    %164 = vector.extract_strided_slice %159 {offsets = [0, 96], sizes = [2, 32], strides = [1, 1]} : vector<2x128xf32> to vector<2x32xf32>
    %165 = arith.mulf %162, %145 : vector<2x32xf32>
    %166 = arith.mulf %161, %163 : vector<2x32xf32>
    %167 = arith.addf %165, %166 : vector<2x32xf32>
    %168 = math.tanh %167 : vector<2x32xf32>
    %169 = arith.mulf %164, %168 : vector<2x32xf32>
    %170 = arith.truncf %169 : vector<2x32xf32> to vector<2x32xbf16>
    %cst_33 = arith.constant dense<0.000000e+00> : vector<2x128xf32>
    %171 = tpu.matmul %170, %16, %cst_33 {dimension_numbers = #tpu.dot_dimension_numbers<[1], [0], [0], [1], [0, 0, 1, 1], [], []>} : vector<2x32xbf16>, vector<32x128xbf16>, vector<2x128xf32> -> vector<2x128xf32>
    %172 = vector.broadcast %17 : vector<1x128xf32> to vector<2x128xf32>
    %173 = arith.addf %171, %172 : vector<2x128xf32>
    %174 = arith.truncf %169 : vector<2x32xf32> to vector<2x32xbf16>
    %cst_34 = arith.constant dense<0.000000e+00> : vector<2x128xf32>
    %175 = tpu.matmul %174, %15, %cst_34 {dimension_numbers = #tpu.dot_dimension_numbers<[1], [0], [0], [1], [0, 0, 1, 1], [], []>} : vector<2x32xbf16>, vector<32x128xbf16>, vector<2x128xf32> -> vector<2x128xf32>
    %176 = arith.addf %14, %175 : vector<2x128xf32>
    %177 = arith.negf %176 : vector<2x128xf32>
    %178 = math.exp %177 : vector<2x128xf32>
    %cst_35 = arith.constant 1.000000e+00 : f32
    %179 = vector.broadcast %cst_35 : f32 to vector<2x128xf32>
    %180 = arith.addf %179, %178 : vector<2x128xf32>
    %181 = arith.divf %179, %180 : vector<2x128xf32>
    %182 = math.tanh %176 : vector<2x128xf32>
    %183 = vector.extract_strided_slice %181 {offsets = [0, 0], sizes = [2, 32], strides = [1, 1]} : vector<2x128xf32> to vector<2x32xf32>
    %184 = vector.extract_strided_slice %181 {offsets = [0, 32], sizes = [2, 32], strides = [1, 1]} : vector<2x128xf32> to vector<2x32xf32>
    %185 = vector.extract_strided_slice %182 {offsets = [0, 64], sizes = [2, 32], strides = [1, 1]} : vector<2x128xf32> to vector<2x32xf32>
    %186 = vector.extract_strided_slice %181 {offsets = [0, 96], sizes = [2, 32], strides = [1, 1]} : vector<2x128xf32> to vector<2x32xf32>
    %187 = arith.mulf %184, %167 : vector<2x32xf32>
    %188 = arith.mulf %183, %185 : vector<2x32xf32>
    %189 = arith.addf %187, %188 : vector<2x32xf32>
    %190 = math.tanh %189 : vector<2x32xf32>
    %191 = arith.mulf %186, %190 : vector<2x32xf32>
    %192 = arith.truncf %191 : vector<2x32xf32> to vector<2x32xbf16>
    %cst_36 = arith.constant dense<0.000000e+00> : vector<2x128xf32>
    %193 = tpu.matmul %192, %16, %cst_36 {dimension_numbers = #tpu.dot_dimension_numbers<[1], [0], [0], [1], [0, 0, 1, 1], [], []>} : vector<2x32xbf16>, vector<32x128xbf16>, vector<2x128xf32> -> vector<2x128xf32>
    %194 = vector.broadcast %17 : vector<1x128xf32> to vector<2x128xf32>
    %195 = arith.addf %193, %194 : vector<2x128xf32>
    %c0_37 = arith.constant 0 : index
    %c0_38 = arith.constant 0 : index
    %196 = vector.load %arg6[%c0_37, %c0_38] : memref<32x128xbf16, #tpu.memory_space<vmem>>, vector<32x128xbf16>
    %cst_39 = arith.constant 0.000000e+00 : f32
    %197 = vector.broadcast %cst_39 : f32 to vector<2x32xf32>
    %cst_40 = arith.constant 0.000000e+00 : f32
    %198 = vector.broadcast %cst_40 : f32 to vector<2x32xf32>
    %199 = arith.truncf %197 : vector<2x32xf32> to vector<2x32xbf16>
    %cst_41 = arith.constant dense<0.000000e+00> : vector<2x128xf32>
    %200 = tpu.matmul %199, %196, %cst_41 {dimension_numbers = #tpu.dot_dimension_numbers<[1], [0], [0], [1], [0, 0, 1, 1], [], []>} : vector<2x32xbf16>, vector<32x128xbf16>, vector<2x128xf32> -> vector<2x128xf32>
    %201 = arith.addf %41, %200 : vector<2x128xf32>
    %202 = arith.negf %201 : vector<2x128xf32>
    %203 = math.exp %202 : vector<2x128xf32>
    %cst_42 = arith.constant 1.000000e+00 : f32
    %204 = vector.broadcast %cst_42 : f32 to vector<2x128xf32>
    %205 = arith.addf %204, %203 : vector<2x128xf32>
    %206 = arith.divf %204, %205 : vector<2x128xf32>
    %207 = math.tanh %201 : vector<2x128xf32>
    %208 = vector.extract_strided_slice %206 {offsets = [0, 0], sizes = [2, 32], strides = [1, 1]} : vector<2x128xf32> to vector<2x32xf32>
    %209 = vector.extract_strided_slice %206 {offsets = [0, 32], sizes = [2, 32], strides = [1, 1]} : vector<2x128xf32> to vector<2x32xf32>
    %210 = vector.extract_strided_slice %207 {offsets = [0, 64], sizes = [2, 32], strides = [1, 1]} : vector<2x128xf32> to vector<2x32xf32>
    %211 = vector.extract_strided_slice %206 {offsets = [0, 96], sizes = [2, 32], strides = [1, 1]} : vector<2x128xf32> to vector<2x32xf32>
    %212 = arith.mulf %209, %198 : vector<2x32xf32>
    %213 = arith.mulf %208, %210 : vector<2x32xf32>
    %214 = arith.addf %212, %213 : vector<2x32xf32>
    %215 = math.tanh %214 : vector<2x32xf32>
    %216 = arith.mulf %211, %215 : vector<2x32xf32>
    %217 = arith.truncf %216 : vector<2x32xf32> to vector<2x32xbf16>
    %cst_43 = arith.constant dense<0.000000e+00> : vector<2x128xf32>
    %218 = tpu.matmul %217, %196, %cst_43 {dimension_numbers = #tpu.dot_dimension_numbers<[1], [0], [0], [1], [0, 0, 1, 1], [], []>} : vector<2x32xbf16>, vector<32x128xbf16>, vector<2x128xf32> -> vector<2x128xf32>
    %219 = arith.addf %63, %218 : vector<2x128xf32>
    %220 = arith.negf %219 : vector<2x128xf32>
    %221 = math.exp %220 : vector<2x128xf32>
    %cst_44 = arith.constant 1.000000e+00 : f32
    %222 = vector.broadcast %cst_44 : f32 to vector<2x128xf32>
    %223 = arith.addf %222, %221 : vector<2x128xf32>
    %224 = arith.divf %222, %223 : vector<2x128xf32>
    %225 = math.tanh %219 : vector<2x128xf32>
    %226 = vector.extract_strided_slice %224 {offsets = [0, 0], sizes = [2, 32], strides = [1, 1]} : vector<2x128xf32> to vector<2x32xf32>
    %227 = vector.extract_strided_slice %224 {offsets = [0, 32], sizes = [2, 32], strides = [1, 1]} : vector<2x128xf32> to vector<2x32xf32>
    %228 = vector.extract_strided_slice %225 {offsets = [0, 64], sizes = [2, 32], strides = [1, 1]} : vector<2x128xf32> to vector<2x32xf32>
    %229 = vector.extract_strided_slice %224 {offsets = [0, 96], sizes = [2, 32], strides = [1, 1]} : vector<2x128xf32> to vector<2x32xf32>
    %230 = arith.mulf %227, %214 : vector<2x32xf32>
    %231 = arith.mulf %226, %228 : vector<2x32xf32>
    %232 = arith.addf %230, %231 : vector<2x32xf32>
    %233 = math.tanh %232 : vector<2x32xf32>
    %234 = arith.mulf %229, %233 : vector<2x32xf32>
    %235 = arith.truncf %234 : vector<2x32xf32> to vector<2x32xbf16>
    %cst_45 = arith.constant dense<0.000000e+00> : vector<2x128xf32>
    %236 = tpu.matmul %235, %196, %cst_45 {dimension_numbers = #tpu.dot_dimension_numbers<[1], [0], [0], [1], [0, 0, 1, 1], [], []>} : vector<2x32xbf16>, vector<32x128xbf16>, vector<2x128xf32> -> vector<2x128xf32>
    %237 = arith.addf %85, %236 : vector<2x128xf32>
    %238 = arith.negf %237 : vector<2x128xf32>
    %239 = math.exp %238 : vector<2x128xf32>
    %cst_46 = arith.constant 1.000000e+00 : f32
    %240 = vector.broadcast %cst_46 : f32 to vector<2x128xf32>
    %241 = arith.addf %240, %239 : vector<2x128xf32>
    %242 = arith.divf %240, %241 : vector<2x128xf32>
    %243 = math.tanh %237 : vector<2x128xf32>
    %244 = vector.extract_strided_slice %242 {offsets = [0, 0], sizes = [2, 32], strides = [1, 1]} : vector<2x128xf32> to vector<2x32xf32>
    %245 = vector.extract_strided_slice %242 {offsets = [0, 32], sizes = [2, 32], strides = [1, 1]} : vector<2x128xf32> to vector<2x32xf32>
    %246 = vector.extract_strided_slice %243 {offsets = [0, 64], sizes = [2, 32], strides = [1, 1]} : vector<2x128xf32> to vector<2x32xf32>
    %247 = vector.extract_strided_slice %242 {offsets = [0, 96], sizes = [2, 32], strides = [1, 1]} : vector<2x128xf32> to vector<2x32xf32>
    %248 = arith.mulf %245, %232 : vector<2x32xf32>
    %249 = arith.mulf %244, %246 : vector<2x32xf32>
    %250 = arith.addf %248, %249 : vector<2x32xf32>
    %251 = math.tanh %250 : vector<2x32xf32>
    %252 = arith.mulf %247, %251 : vector<2x32xf32>
    %253 = arith.truncf %252 : vector<2x32xf32> to vector<2x32xbf16>
    %cst_47 = arith.constant dense<0.000000e+00> : vector<2x128xf32>
    %254 = tpu.matmul %253, %196, %cst_47 {dimension_numbers = #tpu.dot_dimension_numbers<[1], [0], [0], [1], [0, 0, 1, 1], [], []>} : vector<2x32xbf16>, vector<32x128xbf16>, vector<2x128xf32> -> vector<2x128xf32>
    %255 = arith.addf %107, %254 : vector<2x128xf32>
    %256 = arith.negf %255 : vector<2x128xf32>
    %257 = math.exp %256 : vector<2x128xf32>
    %cst_48 = arith.constant 1.000000e+00 : f32
    %258 = vector.broadcast %cst_48 : f32 to vector<2x128xf32>
    %259 = arith.addf %258, %257 : vector<2x128xf32>
    %260 = arith.divf %258, %259 : vector<2x128xf32>
    %261 = math.tanh %255 : vector<2x128xf32>
    %262 = vector.extract_strided_slice %260 {offsets = [0, 0], sizes = [2, 32], strides = [1, 1]} : vector<2x128xf32> to vector<2x32xf32>
    %263 = vector.extract_strided_slice %260 {offsets = [0, 32], sizes = [2, 32], strides = [1, 1]} : vector<2x128xf32> to vector<2x32xf32>
    %264 = vector.extract_strided_slice %261 {offsets = [0, 64], sizes = [2, 32], strides = [1, 1]} : vector<2x128xf32> to vector<2x32xf32>
    %265 = vector.extract_strided_slice %260 {offsets = [0, 96], sizes = [2, 32], strides = [1, 1]} : vector<2x128xf32> to vector<2x32xf32>
    %266 = arith.mulf %263, %250 : vector<2x32xf32>
    %267 = arith.mulf %262, %264 : vector<2x32xf32>
    %268 = arith.addf %266, %267 : vector<2x32xf32>
    %269 = math.tanh %268 : vector<2x32xf32>
    %270 = arith.mulf %265, %269 : vector<2x32xf32>
    %271 = arith.truncf %270 : vector<2x32xf32> to vector<2x32xbf16>
    %cst_49 = arith.constant dense<0.000000e+00> : vector<2x128xf32>
    %272 = tpu.matmul %271, %196, %cst_49 {dimension_numbers = #tpu.dot_dimension_numbers<[1], [0], [0], [1], [0, 0, 1, 1], [], []>} : vector<2x32xbf16>, vector<32x128xbf16>, vector<2x128xf32> -> vector<2x128xf32>
    %273 = arith.addf %129, %272 : vector<2x128xf32>
    %274 = arith.negf %273 : vector<2x128xf32>
    %275 = math.exp %274 : vector<2x128xf32>
    %cst_50 = arith.constant 1.000000e+00 : f32
    %276 = vector.broadcast %cst_50 : f32 to vector<2x128xf32>
    %277 = arith.addf %276, %275 : vector<2x128xf32>
    %278 = arith.divf %276, %277 : vector<2x128xf32>
    %279 = math.tanh %273 : vector<2x128xf32>
    %280 = vector.extract_strided_slice %278 {offsets = [0, 0], sizes = [2, 32], strides = [1, 1]} : vector<2x128xf32> to vector<2x32xf32>
    %281 = vector.extract_strided_slice %278 {offsets = [0, 32], sizes = [2, 32], strides = [1, 1]} : vector<2x128xf32> to vector<2x32xf32>
    %282 = vector.extract_strided_slice %279 {offsets = [0, 64], sizes = [2, 32], strides = [1, 1]} : vector<2x128xf32> to vector<2x32xf32>
    %283 = vector.extract_strided_slice %278 {offsets = [0, 96], sizes = [2, 32], strides = [1, 1]} : vector<2x128xf32> to vector<2x32xf32>
    %284 = arith.mulf %281, %268 : vector<2x32xf32>
    %285 = arith.mulf %280, %282 : vector<2x32xf32>
    %286 = arith.addf %284, %285 : vector<2x32xf32>
    %287 = math.tanh %286 : vector<2x32xf32>
    %288 = arith.mulf %283, %287 : vector<2x32xf32>
    %289 = arith.truncf %288 : vector<2x32xf32> to vector<2x32xbf16>
    %cst_51 = arith.constant dense<0.000000e+00> : vector<2x128xf32>
    %290 = tpu.matmul %289, %196, %cst_51 {dimension_numbers = #tpu.dot_dimension_numbers<[1], [0], [0], [1], [0, 0, 1, 1], [], []>} : vector<2x32xbf16>, vector<32x128xbf16>, vector<2x128xf32> -> vector<2x128xf32>
    %291 = arith.addf %151, %290 : vector<2x128xf32>
    %292 = arith.negf %291 : vector<2x128xf32>
    %293 = math.exp %292 : vector<2x128xf32>
    %cst_52 = arith.constant 1.000000e+00 : f32
    %294 = vector.broadcast %cst_52 : f32 to vector<2x128xf32>
    %295 = arith.addf %294, %293 : vector<2x128xf32>
    %296 = arith.divf %294, %295 : vector<2x128xf32>
    %297 = math.tanh %291 : vector<2x128xf32>
    %298 = vector.extract_strided_slice %296 {offsets = [0, 0], sizes = [2, 32], strides = [1, 1]} : vector<2x128xf32> to vector<2x32xf32>
    %299 = vector.extract_strided_slice %296 {offsets = [0, 32], sizes = [2, 32], strides = [1, 1]} : vector<2x128xf32> to vector<2x32xf32>
    %300 = vector.extract_strided_slice %297 {offsets = [0, 64], sizes = [2, 32], strides = [1, 1]} : vector<2x128xf32> to vector<2x32xf32>
    %301 = vector.extract_strided_slice %296 {offsets = [0, 96], sizes = [2, 32], strides = [1, 1]} : vector<2x128xf32> to vector<2x32xf32>
    %302 = arith.mulf %299, %286 : vector<2x32xf32>
    %303 = arith.mulf %298, %300 : vector<2x32xf32>
    %304 = arith.addf %302, %303 : vector<2x32xf32>
    %305 = math.tanh %304 : vector<2x32xf32>
    %306 = arith.mulf %301, %305 : vector<2x32xf32>
    %307 = arith.truncf %306 : vector<2x32xf32> to vector<2x32xbf16>
    %cst_53 = arith.constant dense<0.000000e+00> : vector<2x128xf32>
    %308 = tpu.matmul %307, %196, %cst_53 {dimension_numbers = #tpu.dot_dimension_numbers<[1], [0], [0], [1], [0, 0, 1, 1], [], []>} : vector<2x32xbf16>, vector<32x128xbf16>, vector<2x128xf32> -> vector<2x128xf32>
    %309 = arith.addf %173, %308 : vector<2x128xf32>
    %310 = arith.negf %309 : vector<2x128xf32>
    %311 = math.exp %310 : vector<2x128xf32>
    %cst_54 = arith.constant 1.000000e+00 : f32
    %312 = vector.broadcast %cst_54 : f32 to vector<2x128xf32>
    %313 = arith.addf %312, %311 : vector<2x128xf32>
    %314 = arith.divf %312, %313 : vector<2x128xf32>
    %315 = math.tanh %309 : vector<2x128xf32>
    %316 = vector.extract_strided_slice %314 {offsets = [0, 0], sizes = [2, 32], strides = [1, 1]} : vector<2x128xf32> to vector<2x32xf32>
    %317 = vector.extract_strided_slice %314 {offsets = [0, 32], sizes = [2, 32], strides = [1, 1]} : vector<2x128xf32> to vector<2x32xf32>
    %318 = vector.extract_strided_slice %315 {offsets = [0, 64], sizes = [2, 32], strides = [1, 1]} : vector<2x128xf32> to vector<2x32xf32>
    %319 = vector.extract_strided_slice %314 {offsets = [0, 96], sizes = [2, 32], strides = [1, 1]} : vector<2x128xf32> to vector<2x32xf32>
    %320 = arith.mulf %317, %304 : vector<2x32xf32>
    %321 = arith.mulf %316, %318 : vector<2x32xf32>
    %322 = arith.addf %320, %321 : vector<2x32xf32>
    %323 = math.tanh %322 : vector<2x32xf32>
    %324 = arith.mulf %319, %323 : vector<2x32xf32>
    %325 = arith.truncf %324 : vector<2x32xf32> to vector<2x32xbf16>
    %cst_55 = arith.constant dense<0.000000e+00> : vector<2x128xf32>
    %326 = tpu.matmul %325, %196, %cst_55 {dimension_numbers = #tpu.dot_dimension_numbers<[1], [0], [0], [1], [0, 0, 1, 1], [], []>} : vector<2x32xbf16>, vector<32x128xbf16>, vector<2x128xf32> -> vector<2x128xf32>
    %327 = arith.addf %195, %326 : vector<2x128xf32>
    %328 = arith.negf %327 : vector<2x128xf32>
    %329 = math.exp %328 : vector<2x128xf32>
    %cst_56 = arith.constant 1.000000e+00 : f32
    %330 = vector.broadcast %cst_56 : f32 to vector<2x128xf32>
    %331 = arith.addf %330, %329 : vector<2x128xf32>
    %332 = arith.divf %330, %331 : vector<2x128xf32>
    %333 = math.tanh %327 : vector<2x128xf32>
    %334 = vector.extract_strided_slice %332 {offsets = [0, 0], sizes = [2, 32], strides = [1, 1]} : vector<2x128xf32> to vector<2x32xf32>
    %335 = vector.extract_strided_slice %332 {offsets = [0, 32], sizes = [2, 32], strides = [1, 1]} : vector<2x128xf32> to vector<2x32xf32>
    %336 = vector.extract_strided_slice %333 {offsets = [0, 64], sizes = [2, 32], strides = [1, 1]} : vector<2x128xf32> to vector<2x32xf32>
    %337 = vector.extract_strided_slice %332 {offsets = [0, 96], sizes = [2, 32], strides = [1, 1]} : vector<2x128xf32> to vector<2x32xf32>
    %338 = arith.mulf %335, %322 : vector<2x32xf32>
    %339 = arith.mulf %334, %336 : vector<2x32xf32>
    %340 = arith.addf %338, %339 : vector<2x32xf32>
    %341 = math.tanh %340 : vector<2x32xf32>
    %342 = arith.mulf %337, %341 : vector<2x32xf32>
    %343 = tpu.concatenate %216, %234, %252, %270 in 1 : vector<2x32xf32>, vector<2x32xf32>, vector<2x32xf32>, vector<2x32xf32> -> vector<2x128xf32>
    %344 = tpu.concatenate %288, %306, %324, %342 in 1 : vector<2x32xf32>, vector<2x32xf32>, vector<2x32xf32>, vector<2x32xf32> -> vector<2x128xf32>
    %345 = tpu.concatenate %343, %344 in 0 : vector<2x128xf32>, vector<2x128xf32> -> vector<4x128xf32>
    %c0_57 = arith.constant 0 : index
    %c0_58 = arith.constant 0 : index
    %346 = vector.load %arg8[%c0_57, %c0_58] : memref<4x128xf32, #tpu.memory_space<vmem>>, vector<4x128xf32>
    tpu.vector_store %arg8[%c0_57, %c0_58], %345 {strides = array<i32>} : memref<4x128xf32, #tpu.memory_space<vmem>>, vector<4x128xf32>,
    return
  }
  func.func @transform_0(%arg0: i32) -> (i32, i32) {
    %c0_i32 = arith.constant 0 : i32
    %c0_i32_0 = arith.constant 0 : i32
    %c0_i32_1 = arith.constant 0 : i32
    return %c0_i32, %c0_i32_0 : i32, i32
  }
  func.func @transform_1(%arg0: i32) -> (i32, i32) {
    %c0_i32 = arith.constant 0 : i32
    %c0_i32_0 = arith.constant 0 : i32
    %c0_i32_1 = arith.constant 0 : i32
    return %c0_i32, %c0_i32_0 : i32, i32
  }
  func.func @transform_2(%arg0: i32) -> (i32, i32) {
    %c0_i32 = arith.constant 0 : i32
    %c0_i32_0 = arith.constant 0 : i32
    %c0_i32_1 = arith.constant 0 : i32
    return %c0_i32, %c0_i32_0 : i32, i32
  }
  func.func @transform_3(%arg0: i32) -> (i32, i32) {
    %c0_i32 = arith.constant 0 : i32
    %c0_i32_0 = arith.constant 0 : i32
    %c0_i32_1 = arith.constant 0 : i32
    return %c0_i32, %c0_i32_0 : i32, i32
  }
  func.func @transform_4(%arg0: i32) -> (i32, i32) {
    %c0_i32 = arith.constant 0 : i32
    %c0_i32_0 = arith.constant 0 : i32
    %c0_i32_1 = arith.constant 0 : i32
    return %c0_i32, %c0_i32_0 : i32, i32
  }
  func.func @transform_5(%arg0: i32) -> (i32, i32) {
    %c0_i32 = arith.constant 0 : i32
    %c0_i32_0 = arith.constant 0 : i32
    %c0_i32_1 = arith.constant 0 : i32
    return %c0_i32, %c0_i32_0 : i32, i32
  }
  func.func @transform_6(%arg0: i32) -> (i32, i32) {
    %c0_i32 = arith.constant 0 : i32
    %c0_i32_0 = arith.constant 0 : i32
    %c0_i32_1 = arith.constant 0 : i32
    return %c0_i32, %c0_i32_0 : i32, i32
  }
  func.func @transform_7(%arg0: i32) -> (i32, i32) {
    %c0_i32 = arith.constant 0 : i32
    %c0_i32_0 = arith.constant 0 : i32
    %c0_i32_1 = arith.constant 0 : i32
    return %c0_i32, %c0_i32_0 : i32, i32
  }
}

</mosaic_0001>

<bundles_post_ra>
// kernel: lstm_stack_forward.1
= control target key start
LH: loop header
LB: loop body
LE: loop exit
PB: predicated region body
PF: predicated region fallthrough
CT: control target
= control target key end

     0   :  { %vm42_vm0 = vcmask 1041408   ;;  %v2156_v0 = vmov 0.0   ;;  %vm2157_vm1 = vmmov 0   ;;  %vm38_vm2 = vcmask 31744   ;;  %s2159_s10 = smov 64   ;;  %s2567_s1 = inlined_call_operand.vmem [shape: bf16[4,128], index: 1, kind: input, shape index: {}]   ;;  %s2568_s2 = inlined_call_operand.vmem [shape: bf16[32,128], index: 2, kind: input, shape index: {}]   ;;  %s2569_s0 = inlined_call_operand.vmem [shape: f32[16,4], index: 0, kind: input, shape index: {}]   ;;  %s2570_s3 = inlined_call_operand.vmem [shape: f32[1,128], index: 3, kind: input, shape index: {}]   ;;  %s2571_s4 = inlined_call_operand.vmem [shape: bf16[32,128], index: 4, kind: input, shape index: {}]   ;;  %s2572_s5 = inlined_call_operand.vmem [shape: bf16[32,128], index: 5, kind: input, shape index: {}]   ;;  %s2573_s6 = inlined_call_operand.vmem [shape: f32[1,128], index: 6, kind: input, shape index: {}]   ;;  %s2574_s7 = inlined_call_operand.vmem [shape: f32[4,128], index: 7, kind: output, shape index: {}]  }
   0x1   :  { %1818 = vmatprep.subr.bf16.mxu0 %v2156_v0  ;;  %v30_v1 = vld [vmem:[%s2567_s1] sm:$0x3]  ;;  %1824 = vmatprep.subr.bf16.mxu1 %v2156_v0  ;;  %v2211_v3 = vld [vmem:[%s2568_s2 + $0x8] sm:$0xff]   ;;  %v2158_v8 = vmov 0   ;;  %vm108_vm3 = vcmask 261120   ;;  %vm1669_vm4 = vcmask 523264  }
   0x2   :  { %v44_v2 = vsel %vm42_vm0, %v30_v1, 0  ;;  %1820 = vmatprep.mubr.msk.bf16.mxu0 %vm2157_vm1, %v2156_v0  ;;  %v27_v4 = vld [vmem:[%s2569_s0] sm:$0xff]  ;;  %v28_v5 = vld [vmem:[%s2569_s0 + $0x8] sm:$0xff]  ;;  %1828 = vmatprep.mubr.msk.bf16.mxu1 %vm2157_vm1, %v2156_v0  ;;  %vm1671_vm5 = vcmask 785408  }
   0x3   :  { %1819 = vmatpush3.bf16.msra.mxu0 %v44_v2  ;;  %v29_v6 = vpack.c.bf16 %v28_v5, %v27_v4  ;;  %1825 = vmatpush3.bf16.msra.mxu1 %v2211_v3  ;;  %v2227_v7 = vld [vmem:[%s2568_s2] sm:$0xff]   ;;  %v2255_v31 = vld [vmem:[%s2571_s4 + $0x8] sm:$0xff]  }
   0x4   :  { %1832 = vmatprep.subr.bf16.mxu0 %v2156_v0  ;;  %1826 = vmatprep.subr.bf16.mxu1 %v2156_v0  ;;  %v1697_v9 = vld [vmem:[%s2570_s3] ss:$0 sm:$0xff]  ;;  %s2160_s3 = smov 32  }
   0x5   :  { %v2261_v32 = vld [vmem:[%s2571_s4] sm:$0xff]  }
   0x6   :  { %1821 = vmatmul.mubr.msk.bf16.vlgmr.msra.gmra.mxu0 %vm38_vm2, %v29_v6 }
   0x7   :  { %1836 = vmatprep.mubr.msk.bf16.mxu0 %vm2157_vm1, %v2156_v0  ;;  %1827 = vmatpush3.bf16.msra.mxu1 %v2227_v7 }
   0x8   :  { %1840 = vmatprep.subr.bf16.mxu1 %v2156_v0  ;;  %1833 = vmatpush3.bf16.msra.mxu0 %v2255_v31 }
   0x9   :  { %1834 = vmatprep.subr.bf16.mxu0 %v2156_v0 }
   0xa   :  { %1829 = vmatmul.mubr.bf16.vlgmr.msra.gmra.mxu1 %v2158_v8 }
   0xb   :  { %1841 = vmatpush3.bf16.msra.mxu1 %v2211_v3  ;;  %1844 = vmatprep.mubr.msk.bf16.mxu1 %vm2157_vm1, %v2156_v0 }
   0xc   :  { %1842 = vmatprep.subr.bf16.mxu1 %v2156_v0  ;;  %1835 = vmatpush3.bf16.msra.mxu0 %v2261_v32 }
   0xd   :  { %1848 = vmatprep.subr.bf16.mxu0 %v2156_v0 }
   0xf   :  { %1843 = vmatpush3.bf16.msra.mxu1 %v2227_v7 }
  0x10   :  { %1856 = vmatprep.subr.bf16.mxu1 %v2156_v0 }
  0xc6   :  { %v80_v10 = vpop.f32.mrf.mxu0 }
  0xc7   :  { %v2245_v11 = vadd.f32 %v1697_v9, %v80_v10 }
  0xc8   :  { %v1822_v12 = vpop.f32.mrf.mxu0 }
  0xca   :  { %v83_v13 = vpop.f32.mrf.mxu0  ;;  %v146_v15 = vpop.f32.mrf.mxu1 }
  0xcb   :  { %v2247_v14 = vadd.f32 %v1697_v9, %v83_v13  ;;  %v152_v16 = vadd.f32 %v146_v15, %v2245_v11 }
  0xcc   :  { %v1823_v17 = vpop.f32.mrf.mxu0  ;;  %v1830_v18 = vpop.f32.mrf.mxu1 }
  0xcd   :  { %2028 = vtanh.f32 %v152_v16  ;;  %v1701_v22 = vmul.f32 -1.442695, %v152_v16 }
  0xce   :  { %v149_v19 = vpop.f32.mrf.mxu1 }
  0xcf   :  { %2030 = vpow2.f32 %v1701_v22 }
  0xd0   :  { %v1831_v20 = vpop.f32.mrf.mxu1 }
  0xda   :  { %v2029_v21 = vpop.eup %2028 }
  0xdb   :  { %162 = vrot.lane.b32.xlu0 %v2029_v21, %s2159_s10 }
  0xdc   :  { %v2031_v23 = vpop.eup %2030 }
  0xdd   :  { %v156_v24 = vadd.f32 1.0, %v2031_v23 }
  0xdf   :  { %2032 = vrcp.f32 %v156_v24 }
  0xec   :  { %v2033_v25 = vpop.eup %2032 }
  0xed   :  { %v160_v28 = vmul.f32 0.0, %v2033_v25 }
 0x14d   :  { %v163_v26 = vpop.permute.xlu0 %162 }
 0x14e   :  { %v165_v27 = vmul.f32 %v2033_v25, %v163_v26 }
 0x150   :  { %167 = vrot.lane.b32.xlu0 %v165_v27, %s2160_s3 }
 0x1c2   :  { %v168_v29 = vpop.permute.xlu0 %167 }
 0x1c3   :  { %v170_v30 = vadd.f32 %v168_v29, %v160_v28 }
 0x1c5   :  { %2034 = vtanh.f32 %v170_v30  ;;  %v294_v55 = vrot.slane %v170_v30, 6 }
 0x1d2   :  { %v2035_v33 = vpop.eup %2034 }
 0x1d3   :  { %173 = vrot.lane.b32.xlu1 %v2035_v33, %s2159_s10 }
 0x245   :  { %v174_v34 = vpop.permute.xlu1 %173 }
 0x246   :  { %v176_v35 = vmul.f32 %v2033_v25, %v174_v34 }
 0x248   :  { %v177_v36 = vpack.c.bf16 %v176_v35, %v176_v35 }
 0x24a   :  { %185 = vrot.lane.b32.xlu1 %v177_v36, %s2160_s3 }
 0x2bc   :  { %v186_v37 = vpop.permute.xlu1 %185 }
 0x2bd   :  { %1837 = vmatmul.mubr.msk.bf16.vlgmr.msra.gmra.mxu0 %vm108_vm3, %v186_v37  ;;  %1845 = vmatmul.mubr.msk.bf16.vlgmr.msra.gmra.mxu1 %vm108_vm3, %v186_v37 }
 0x2be   :  { %1857 = vmatpush3.bf16.msra.mxu1 %v2211_v3  ;;  %1849 = vmatpush3.bf16.msra.mxu0 %v2255_v31 }
 0x2bf   :  { %1858 = vmatprep.subr.bf16.mxu1 %v2156_v0  ;;  %1850 = vmatprep.subr.bf16.mxu0 %v2156_v0 }
 0x2c0   :  { %1860 = vmatprep.mubr.msk.bf16.mxu1 %vm2157_vm1, %v2156_v0  ;;  %1852 = vmatprep.mubr.msk.bf16.mxu0 %vm2157_vm1, %v2156_v0 }
 0x2c2   :  { %1859 = vmatpush3.bf16.msra.mxu1 %v2227_v7  ;;  %1851 = vmatpush3.bf16.msra.mxu0 %v2261_v32 }
 0x2c3   :  { %1872 = vmatprep.subr.bf16.mxu1 %v2156_v0  ;;  %1864 = vmatprep.subr.bf16.mxu0 %v2156_v0 }
 0x37d   :  { %v2282_v38 = vpop.f32.mrf.mxu0  ;;  %v276_v39 = vpop.f32.mrf.mxu1 }
 0x37e   :  { %v283_v40 = vrot.slane %v276_v39, 6 }
 0x37f   :  { %v1838_v41 = vpop.f32.mrf.mxu0  ;;  %v1846_v42 = vpop.f32.mrf.mxu1 }
 0x380   :  { %v285_v43 = vadd.f32 %v283_v40, %v2245_v11 }
 0x381   :  { %v239_v44 = vpop.f32.mrf.mxu0  ;;  %v279_v45 = vpop.f32.mrf.mxu1 }
 0x382   :  { %2036 = vtanh.f32 %v285_v43  ;;  %v1707_v49 = vmul.f32 -1.442695, %v285_v43 }
 0x383   :  { %v1839_v46 = vpop.f32.mrf.mxu0  ;;  %v1847_v47 = vpop.f32.mrf.mxu1 }
 0x384   :  { %2038 = vpow2.f32 %v1707_v49 }
 0x38f   :  { %v2037_v48 = vpop.eup %2036 }
 0x390   :  { %298 = vrot.lane.b32.xlu0 %v2037_v48, %s2159_s10 }
 0x391   :  { %v2039_v50 = vpop.eup %2038 }
 0x392   :  { %v289_v51 = vadd.f32 1.0, %v2039_v50 }
 0x394   :  { %2040 = vrcp.f32 %v289_v51 }
 0x3a1   :  { %v2041_v52 = vpop.eup %2040 }
 0x3a2   :  { %v296_v56 = vmul.f32 %v2041_v52, %v294_v55 }
 0x402   :  { %v299_v53 = vpop.permute.xlu0 %298 }
 0x403   :  { %v301_v54 = vmul.f32 %v2041_v52, %v299_v53 }
 0x405   :  { %303 = vrot.lane.b32.xlu1 %v301_v54, %s2160_s3 }
 0x477   :  { %v304_v57 = vpop.permute.xlu1 %303 }
 0x478   :  { %v306_v58 = vadd.f32 %v304_v57, %v296_v56 }
 0x47a   :  { %2042 = vtanh.f32 %v306_v58  ;;  %v413_v24 = vrot.slane %v306_v58, 6 }
 0x487   :  { %v2043_v59 = vpop.eup %2042 }
 0x488   :  { %309 = vrot.lane.b32.xlu0 %v2043_v59, %s2159_s10 }
 0x4fa   :  { %v310_v60 = vpop.permute.xlu0 %309 }
 0x4fb   :  { %v312_v61 = vmul.f32 %v2041_v52, %v310_v60 }
 0x4fd   :  { %v313_v62 = vpack.c.bf16 %v312_v61, %v312_v61 }
 0x4ff   :  { %v315_v63 = vrot.slane %v313_v62, 1 }
 0x501   :  { %316 = vrot.lane.b32.xlu1 %v315_v63, %s2160_s3 }
 0x573   :  { %v317_v1 = vpop.permute.xlu1 %316 }
 0x574   :  { %1853 = vmatmul.mubr.msk.bf16.vlgmr.msra.gmra.mxu0 %vm108_vm3, %v317_v1  ;;  %1861 = vmatmul.mubr.msk.bf16.vlgmr.msra.gmra.mxu1 %vm108_vm3, %v317_v1 }
 0x575   :  { %1873 = vmatpush3.bf16.msra.mxu1 %v2211_v3  ;;  %1865 = vmatpush3.bf16.msra.mxu0 %v2255_v31 }
 0x576   :  { %1874 = vmatprep.subr.bf16.mxu1 %v2156_v0  ;;  %1866 = vmatprep.subr.bf16.mxu0 %v2156_v0 }
 0x577   :  { %1876 = vmatprep.mubr.msk.bf16.mxu1 %vm2157_vm1, %v2156_v0  ;;  %1868 = vmatprep.mubr.msk.bf16.mxu0 %vm2157_vm1, %v2156_v0 }
 0x579   :  { %1875 = vmatpush3.bf16.msra.mxu1 %v2227_v7  ;;  %1867 = vmatpush3.bf16.msra.mxu0 %v2261_v32 }
 0x57a   :  { %1888 = vmatprep.subr.bf16.mxu1 %v2156_v0  ;;  %1880 = vmatprep.subr.bf16.mxu0 %v2156_v0 }
 0x634   :  { %v2303_v2 = vpop.f32.mrf.mxu0  ;;  %v395_v4 = vpop.f32.mrf.mxu1 }
 0x635   :  { %v402_v5 = vrot.slane %v395_v4, 4 }
 0x636   :  { %v1854_v6 = vpop.f32.mrf.mxu0  ;;  %v1862_v9 = vpop.f32.mrf.mxu1 }
 0x637   :  { %v404_v10 = vadd.f32 %v402_v5, %v2245_v11 }
 0x638   :  { %v358_v12 = vpop.f32.mrf.mxu0  ;;  %v398_v13 = vpop.f32.mrf.mxu1 }
 0x639   :  { %2044 = vtanh.f32 %v404_v10  ;;  %v1710_v18 = vmul.f32 -1.442695, %v404_v10 }
 0x63a   :  { %v1855_v15 = vpop.f32.mrf.mxu0  ;;  %v1863_v16 = vpop.f32.mrf.mxu1 }
 0x63b   :  { %2046 = vpow2.f32 %v1710_v18 }
 0x646   :  { %v2045_v17 = vpop.eup %2044 }
 0x647   :  { %417 = vrot.lane.b32.xlu0 %v2045_v17, %s2159_s10 }
 0x648   :  { %v2047_v19 = vpop.eup %2046 }
 0x649   :  { %v408_v20 = vadd.f32 1.0, %v2047_v19 }
 0x64b   :  { %2048 = vrcp.f32 %v408_v20 }
 0x658   :  { %v2049_v21 = vpop.eup %2048 }
 0x659   :  { %v415_v25 = vmul.f32 %v2049_v21, %v413_v24 }
 0x6b9   :  { %v418_v22 = vpop.permute.xlu0 %417 }
 0x6ba   :  { %v420_v23 = vmul.f32 %v2049_v21, %v418_v22 }
 0x6bc   :  { %422 = vrot.lane.b32.xlu1 %v420_v23, %s2160_s3 }
 0x72e   :  { %v423_v26 = vpop.permute.xlu1 %422 }
 0x72f   :  { %v425_v27 = vadd.f32 %v423_v26, %v415_v25 }
 0x731   :  { %2050 = vtanh.f32 %v425_v27  ;;  %v532_v54 = vrot.slane %v425_v27, 6 }
 0x73e   :  { %v2051_v28 = vpop.eup %2050 }
 0x73f   :  { %428 = vrot.lane.b32.xlu0 %v2051_v28, %s2159_s10 }
 0x7b1   :  { %v429_v29 = vpop.permute.xlu0 %428 }
 0x7b2   :  { %v431_v30 = vmul.f32 %v2049_v21, %v429_v29 }
 0x7b4   :  { %v432_v33 = vpack.c.bf16 %v431_v30, %v431_v30 }
 0x7b6   :  { %v434_v34 = vrot.slane %v432_v33, 2 }
 0x7b8   :  { %435 = vrot.lane.b32.xlu1 %v434_v34, %s2160_s3 }
 0x82a   :  { %v436_v35 = vpop.permute.xlu1 %435 }
 0x82b   :  { %1869 = vmatmul.mubr.msk.bf16.vlgmr.msra.gmra.mxu0 %vm108_vm3, %v436_v35  ;;  %1877 = vmatmul.mubr.msk.bf16.vlgmr.msra.gmra.mxu1 %vm108_vm3, %v436_v35 }
 0x82c   :  { %1889 = vmatpush3.bf16.msra.mxu1 %v2211_v3  ;;  %1881 = vmatpush3.bf16.msra.mxu0 %v2255_v31 }
 0x82d   :  { %1890 = vmatprep.subr.bf16.mxu1 %v2156_v0  ;;  %1882 = vmatprep.subr.bf16.mxu0 %v2156_v0 }
 0x82e   :  { %1892 = vmatprep.mubr.msk.bf16.mxu1 %vm2157_vm1, %v2156_v0  ;;  %1884 = vmatprep.mubr.msk.bf16.mxu0 %vm2157_vm1, %v2156_v0 }
 0x830   :  { %1891 = vmatpush3.bf16.msra.mxu1 %v2227_v7  ;;  %1883 = vmatpush3.bf16.msra.mxu0 %v2261_v32 }
 0x831   :  { %1904 = vmatprep.subr.bf16.mxu1 %v2156_v0  ;;  %1896 = vmatprep.subr.bf16.mxu0 %v2156_v0 }
 0x8eb   :  { %v2324_v36 = vpop.f32.mrf.mxu0  ;;  %v514_v37 = vpop.f32.mrf.mxu1 }
 0x8ec   :  { %v521_v39 = vrot.slane %v514_v37, 2 }
 0x8ed   :  { %v1870_v40 = vpop.f32.mrf.mxu0  ;;  %v1878_v41 = vpop.f32.mrf.mxu1 }
 0x8ee   :  { %v523_v42 = vadd.f32 %v521_v39, %v2245_v11 }
 0x8ef   :  { %v477_v43 = vpop.f32.mrf.mxu0  ;;  %v517_v44 = vpop.f32.mrf.mxu1 }
 0x8f0   :  { %2052 = vtanh.f32 %v523_v42  ;;  %v1713_v48 = vmul.f32 -1.442695, %v523_v42 }
 0x8f1   :  { %v1871_v45 = vpop.f32.mrf.mxu0  ;;  %v1879_v46 = vpop.f32.mrf.mxu1 }
 0x8f2   :  { %2054 = vpow2.f32 %v1713_v48 }
 0x8fd   :  { %v2053_v47 = vpop.eup %2052 }
 0x8fe   :  { %536 = vrot.lane.b32.xlu0 %v2053_v47, %s2159_s10 }
 0x8ff   :  { %v2055_v49 = vpop.eup %2054 }
 0x900   :  { %v527_v50 = vadd.f32 1.0, %v2055_v49 }
 0x902   :  { %2056 = vrcp.f32 %v527_v50 }
 0x90f   :  { %v2057_v51 = vpop.eup %2056 }
 0x910   :  { %v534_v11 = vmul.f32 %v2057_v51, %v532_v54 }
 0x970   :  { %v537_v52 = vpop.permute.xlu0 %536 }
 0x971   :  { %v539_v53 = vmul.f32 %v2057_v51, %v537_v52 }
 0x973   :  { %541 = vrot.lane.b32.xlu1 %v539_v53, %s2160_s3 }
 0x9e5   :  { %v542_v55 = vpop.permute.xlu1 %541 }
 0x9e6   :  { %v544_v56 = vadd.f32 %v542_v55, %v534_v11 }
 0x9e8   :  { %2058 = vtanh.f32 %v544_v56  ;;  %v648_v22 = vrot.slane %v544_v56, 6 }
 0x9f5   :  { %v2059_v57 = vpop.eup %2058 }
 0x9f6   :  { %547 = vrot.lane.b32.xlu0 %v2059_v57, %s2159_s10 }
 0xa68   :  { %v548_v58 = vpop.permute.xlu0 %547 }
 0xa69   :  { %v550_v59 = vmul.f32 %v2057_v51, %v548_v58 }
 0xa6b   :  { %v551_v60 = vpack.c.bf16 %v550_v59, %v550_v59 }
 0xa6d   :  { %v553_v61 = vrot.slane %v551_v60, 3 }
 0xa6f   :  { %554 = vrot.lane.b32.xlu1 %v553_v61, %s2160_s3 }
 0xae1   :  { %v555_v62 = vpop.permute.xlu1 %554 }
 0xae2   :  { %1885 = vmatmul.mubr.msk.bf16.vlgmr.msra.gmra.mxu0 %vm108_vm3, %v555_v62  ;;  %1893 = vmatmul.mubr.msk.bf16.vlgmr.msra.gmra.mxu1 %vm108_vm3, %v555_v62 }
 0xae3   :  { %1905 = vmatpush3.bf16.msra.mxu1 %v2211_v3  ;;  %1897 = vmatpush3.bf16.msra.mxu0 %v2255_v31 }
 0xae4   :  { %1906 = vmatprep.subr.bf16.mxu1 %v2156_v0  ;;  %1898 = vmatprep.subr.bf16.mxu0 %v2156_v0 }
 0xae5   :  { %1900 = vmatprep.mubr.msk.bf16.mxu0 %vm2157_vm1, %v2156_v0  ;;  %1908 = vmatprep.mubr.msk.bf16.mxu1 %vm2157_vm1, %v2156_v0 }
 0xae7   :  { %1907 = vmatpush3.bf16.msra.mxu1 %v2227_v7  ;;  %1899 = vmatpush3.bf16.msra.mxu0 %v2261_v32 }
 0xae8   :  { %1920 = vmatprep.subr.bf16.mxu1 %v2156_v0  ;;  %1912 = vmatprep.subr.bf16.mxu0 %v2156_v0 }
 0xba2   :  { %v2345_v63 = vpop.f32.mrf.mxu0  ;;  %v633_v1 = vpop.f32.mrf.mxu1 }
 0xba3   :  { %v639_v4 = vadd.f32 %v633_v1, %v2247_v14 }
 0xba4   :  { %v1886_v5 = vpop.f32.mrf.mxu0  ;;  %v1894_v6 = vpop.f32.mrf.mxu1 }
 0xba5   :  { %2060 = vtanh.f32 %v639_v4  ;;  %v1716_v16 = vmul.f32 -1.442695, %v639_v4 }
 0xba6   :  { %v596_v9 = vpop.f32.mrf.mxu0  ;;  %v636_v10 = vpop.f32.mrf.mxu1 }
 0xba7   :  { %2062 = vpow2.f32 %v1716_v16 }
 0xba8   :  { %v1887_v12 = vpop.f32.mrf.mxu0  ;;  %v1895_v13 = vpop.f32.mrf.mxu1 }
 0xbb2   :  { %v2061_v15 = vpop.eup %2060 }
 0xbb3   :  { %652 = vrot.lane.b32.xlu0 %v2061_v15, %s2159_s10 }
 0xbb4   :  { %v2063_v17 = vpop.eup %2062 }
 0xbb5   :  { %v643_v18 = vadd.f32 1.0, %v2063_v17 }
 0xbb7   :  { %2064 = vrcp.f32 %v643_v18 }
 0xbc4   :  { %v2065_v19 = vpop.eup %2064 }
 0xbc5   :  { %v650_v23 = vmul.f32 %v2065_v19, %v648_v22 }
 0xc25   :  { %v653_v20 = vpop.permute.xlu0 %652 }
 0xc26   :  { %v655_v21 = vmul.f32 %v2065_v19, %v653_v20 }
 0xc28   :  { %657 = vrot.lane.b32.xlu1 %v655_v21, %s2160_s3 }
 0xc9a   :  { %v658_v24 = vpop.permute.xlu1 %657 }
 0xc9b   :  { %v660_v25 = vadd.f32 %v658_v24, %v650_v23 }
 0xc9d   :  { %2066 = vtanh.f32 %v660_v25  ;;  %v766_v52 = vrot.slane %v660_v25, 6 }
 0xcaa   :  { %v2067_v26 = vpop.eup %2066 }
 0xcab   :  { %663 = vrot.lane.b32.xlu0 %v2067_v26, %s2159_s10 }
 0xd1d   :  { %v664_v27 = vpop.permute.xlu0 %663 }
 0xd1e   :  { %v666_v28 = vmul.f32 %v2065_v19, %v664_v27 }
 0xd20   :  { %v667_v29 = vpack.c.bf16 %v666_v28, %v666_v28 }
 0xd22   :  { %669 = vrot.lane.b32.xlu1 %v667_v29, %s2160_s3  ;;  %v2400_v29 = vld [vmem:[%s2572_s5 + $0x8] sm:$0xff]  }
 0xd94   :  { %v670_v30 = vpop.permute.xlu1 %669 }
 0xd95   :  { %1901 = vmatmul.mubr.msk.bf16.vlgmr.msra.gmra.mxu0 %vm108_vm3, %v670_v30  ;;  %1909 = vmatmul.mubr.msk.bf16.vlgmr.msra.gmra.mxu1 %vm108_vm3, %v670_v30 }
 0xd96   :  { %1921 = vmatpush3.bf16.msra.mxu1 %v2211_v3  ;;  %1913 = vmatpush3.bf16.msra.mxu0 %v2255_v31 }
 0xd97   :  { %1922 = vmatprep.subr.bf16.mxu1 %v2156_v0  ;;  %1914 = vmatprep.subr.bf16.mxu0 %v2156_v0 }
 0xd98   :  { %1924 = vmatprep.mubr.msk.bf16.mxu1 %vm2157_vm1, %v2156_v0  ;;  %1916 = vmatprep.mubr.msk.bf16.mxu0 %vm2157_vm1, %v2156_v0 }
 0xd9a   :  { %1923 = vmatpush3.bf16.msra.mxu1 %v2227_v7  ;;  %1915 = vmatpush3.bf16.msra.mxu0 %v2261_v32 }
 0xd9b   :  { %1936 = vmatprep.subr.bf16.mxu1 %v2156_v0  ;;  %1928 = vmatprep.subr.bf16.mxu0 %v2156_v0 }
 0xe55   :  { %v2366_v33 = vpop.f32.mrf.mxu0  ;;  %v748_v34 = vpop.f32.mrf.mxu1 }
 0xe56   :  { %v755_v35 = vrot.slane %v748_v34, 6  ;;  %v2408_v34 = vld [vmem:[%s2572_s5] sm:$0xff]  }
 0xe57   :  { %v1902_v37 = vpop.f32.mrf.mxu0  ;;  %v1910_v39 = vpop.f32.mrf.mxu1 }
 0xe58   :  { %v757_v40 = vadd.f32 %v755_v35, %v2247_v14 }
 0xe59   :  { %v711_v41 = vpop.f32.mrf.mxu0  ;;  %v751_v42 = vpop.f32.mrf.mxu1 }
 0xe5a   :  { %2068 = vtanh.f32 %v757_v40  ;;  %v1719_v46 = vmul.f32 -1.442695, %v757_v40 }
 0xe5b   :  { %v1903_v43 = vpop.f32.mrf.mxu0  ;;  %v1911_v44 = vpop.f32.mrf.mxu1 }
 0xe5c   :  { %2070 = vpow2.f32 %v1719_v46 }
 0xe67   :  { %v2069_v45 = vpop.eup %2068 }
 0xe68   :  { %770 = vrot.lane.b32.xlu0 %v2069_v45, %s2159_s10 }
 0xe69   :  { %v2071_v47 = vpop.eup %2070 }
 0xe6a   :  { %v761_v48 = vadd.f32 1.0, %v2071_v47 }
 0xe6c   :  { %2072 = vrcp.f32 %v761_v48 }
 0xe79   :  { %v2073_v49 = vpop.eup %2072 }
 0xe7a   :  { %v768_v53 = vmul.f32 %v2073_v49, %v766_v52 }
 0xeda   :  { %v771_v50 = vpop.permute.xlu0 %770 }
 0xedb   :  { %v773_v51 = vmul.f32 %v2073_v49, %v771_v50 }
 0xedd   :  { %775 = vrot.lane.b32.xlu1 %v773_v51, %s2160_s3 }
 0xf4f   :  { %v776_v54 = vpop.permute.xlu1 %775 }
 0xf50   :  { %v778_v11 = vadd.f32 %v776_v54, %v768_v53 }
 0xf52   :  { %2074 = vtanh.f32 %v778_v11  ;;  %v885_v20 = vrot.slane %v778_v11, 6 }
 0xf5f   :  { %v2075_v55 = vpop.eup %2074 }
 0xf60   :  { %781 = vrot.lane.b32.xlu0 %v2075_v55, %s2159_s10 }
 0xfd2   :  { %v782_v56 = vpop.permute.xlu0 %781 }
 0xfd3   :  { %v784_v57 = vmul.f32 %v2073_v49, %v782_v56 }
 0xfd5   :  { %v785_v58 = vpack.c.bf16 %v784_v57, %v784_v57 }
 0xfd7   :  { %v787_v59 = vrot.slane %v785_v58, 1 }
 0xfd9   :  { %788 = vrot.lane.b32.xlu1 %v787_v59, %s2160_s3 }
0x104b   :  { %v789_v60 = vpop.permute.xlu1 %788 }
0x104c   :  { %1917 = vmatmul.mubr.msk.bf16.vlgmr.msra.gmra.mxu0 %vm108_vm3, %v789_v60  ;;  %1925 = vmatmul.mubr.msk.bf16.vlgmr.msra.gmra.mxu1 %vm108_vm3, %v789_v60 }
0x104d   :  { %1937 = vmatpush3.bf16.msra.mxu1 %v2211_v3  ;;  %1929 = vmatpush3.bf16.msra.mxu0 %v2255_v31 }
0x104e   :  { %1938 = vmatprep.subr.bf16.mxu1 %v2156_v0  ;;  %1930 = vmatprep.subr.bf16.mxu0 %v2156_v0 }
0x104f   :  { %1940 = vmatprep.mubr.msk.bf16.mxu1 %vm2157_vm1, %v2156_v0  ;;  %1932 = vmatprep.mubr.msk.bf16.mxu0 %vm2157_vm1, %v2156_v0 }
0x1051   :  { %1939 = vmatpush3.bf16.msra.mxu1 %v2227_v7  ;;  %1931 = vmatpush3.bf16.msra.mxu0 %v2261_v32 }
0x1052   :  { %1952 = vmatprep.subr.bf16.mxu1 %v2156_v0  ;;  %1944 = vmatprep.subr.bf16.mxu0 %v2156_v0 }
0x110c   :  { %v2387_v3 = vpop.f32.mrf.mxu0  ;;  %v867_v61 = vpop.f32.mrf.mxu1 }
0x110d   :  { %v874_v62 = vrot.slane %v867_v61, 4 }
0x110e   :  { %v1918_v1 = vpop.f32.mrf.mxu0  ;;  %v1926_v4 = vpop.f32.mrf.mxu1 }
0x110f   :  { %v876_v5 = vadd.f32 %v874_v62, %v2247_v14 }
0x1110   :  { %v830_v6 = vpop.f32.mrf.mxu0  ;;  %v870_v9 = vpop.f32.mrf.mxu1 }
0x1111   :  { %2076 = vtanh.f32 %v876_v5  ;;  %v1722_v13 = vmul.f32 -1.442695, %v876_v5 }
0x1112   :  { %v1919_v10 = vpop.f32.mrf.mxu0  ;;  %v1927_v12 = vpop.f32.mrf.mxu1 }
0x1113   :  { %2078 = vpow2.f32 %v1722_v13 }
0x111e   :  { %v2077_v7 = vpop.eup %2076 }
0x111f   :  { %889 = vrot.lane.b32.xlu0 %v2077_v7, %s2159_s10 }
0x1120   :  { %v2079_v15 = vpop.eup %2078 }
0x1121   :  { %v880_v16 = vadd.f32 1.0, %v2079_v15 }
0x1123   :  { %2080 = vrcp.f32 %v880_v16 }
0x1130   :  { %v2081_v17 = vpop.eup %2080 }
0x1131   :  { %v887_v21 = vmul.f32 %v2081_v17, %v885_v20 }
0x1191   :  { %v890_v18 = vpop.permute.xlu0 %889 }
0x1192   :  { %v892_v19 = vmul.f32 %v2081_v17, %v890_v18 }
0x1194   :  { %894 = vrot.lane.b32.xlu1 %v892_v19, %s2160_s3 }
0x1206   :  { %v895_v22 = vpop.permute.xlu1 %894 }
0x1207   :  { %v2392_v23 = vadd.f32 %v895_v22, %v887_v21 }
0x1209   :  { %2082 = vtanh.f32 %v2392_v23  ;;  %v1004_v62 = vrot.slane %v2392_v23, 6 }
0x1216   :  { %v2083_v24 = vpop.eup %2082 }
0x1217   :  { %900 = vrot.lane.b32.xlu0 %v2083_v24, %s2159_s10 }
0x1289   :  { %v901_v25 = vpop.permute.xlu0 %900 }
0x128a   :  { %v903_v26 = vmul.f32 %v2081_v17, %v901_v25 }
0x128c   :  { %v904_v27 = vpack.c.bf16 %v903_v26, %v903_v26 }
0x128e   :  { %v906_v28 = vrot.slane %v904_v27, 2 }
0x1290   :  { %907 = vrot.lane.b32.xlu1 %v906_v28, %s2160_s3 }
0x1302   :  { %v908_v30 = vpop.permute.xlu1 %907 }
0x1303   :  { %1933 = vmatmul.mubr.msk.bf16.vlgmr.msra.gmra.mxu0 %vm108_vm3, %v908_v30  ;;  %1941 = vmatmul.mubr.msk.bf16.vlgmr.msra.gmra.mxu1 %vm108_vm3, %v908_v30 }
0x1304   :  { %1953 = vmatpush3.bf16.msra.mxu1 %v2400_v29  ;;  %1956 = vmatprep.mubr.msk.bf16.mxu1 %vm2157_vm1, %v2156_v0 }
0x1305   :  { %1954 = vmatprep.subr.bf16.mxu1 %v2156_v0  ;;  %1945 = vmatpush3.bf16.msra.mxu0 %v2255_v31 }
0x1306   :  { %1946 = vmatprep.subr.bf16.mxu0 %v2156_v0  ;;  %1948 = vmatprep.mubr.msk.bf16.mxu0 %vm2157_vm1, %v2156_v0 }
0x1308   :  { %1955 = vmatpush3.bf16.msra.mxu1 %v2408_v34 }
0x1309   :  { %1947 = vmatpush3.bf16.msra.mxu0 %v2261_v32  ;;  %1968 = vmatprep.subr.bf16.mxu1 %v2156_v0 }
0x130a   :  { %1960 = vmatprep.subr.bf16.mxu0 %v2156_v0 }
0x130b   :  { %1957 = vmatmul.mubr.bf16.vlgmr.msra.gmra.mxu1 %v2158_v8  ;;  %v2434_v8 = vld [vmem:[%s2573_s6] ss:$0 sm:$0xff]  ;;  %s2161_s6 = smov 96  }
0x130c   :  { %1969 = vmatpush3.bf16.msra.mxu1 %v2400_v29  ;;  %1972 = vmatprep.mubr.msk.bf16.mxu1 %vm2157_vm1, %v2156_v0  ;;  %v237_v45 = vadd.f32 %v2434_v8, %v2282_v38  ;;  %v356_v27 = vadd.f32 %v2434_v8, %v2303_v2 }
0x130d   :  { %1970 = vmatprep.subr.bf16.mxu1 %v2156_v0 }
0x1310   :  { %1971 = vmatpush3.bf16.msra.mxu1 %v2408_v34 }
0x1311   :  { %1984 = vmatprep.subr.bf16.mxu1 %v2156_v0 }
0x13c3   :  { %v2428_v31 = vpop.f32.mrf.mxu0  ;;  %v986_v32 = vpop.f32.mrf.mxu1 }
0x13c4   :  { %v993_v35 = vrot.slane %v986_v32, 2 }
0x13c5   :  { %v1934_v37 = vpop.f32.mrf.mxu0  ;;  %v1942_v39 = vpop.f32.mrf.mxu1 }
0x13c6   :  { %v995_v40 = vadd.f32 %v993_v35, %v2247_v14 }
0x13c7   :  { %v949_v41 = vpop.f32.mrf.mxu0  ;;  %v989_v42 = vpop.f32.mrf.mxu1 }
0x13c8   :  { %2084 = vtanh.f32 %v995_v40  ;;  %v1725_v52 = vmul.f32 -1.442695, %v995_v40 }
0x13c9   :  { %v1935_v43 = vpop.f32.mrf.mxu0  ;;  %v1943_v44 = vpop.f32.mrf.mxu1 }
0x13cb   :  { %v1121_v46 = vpop.f32.mrf.mxu1 }
0x13cc   :  { %v1127_v47 = vadd.f32 %v1121_v46, %v237_v45 }
0x13cd   :  { %v1958_v48 = vpop.f32.mrf.mxu1 }
0x13ce   :  { %2086 = vtanh.f32 %v1127_v47  ;;  %v1729_v53 = vmul.f32 -1.442695, %v1127_v47 }
0x13cf   :  { %v1124_v49 = vpop.f32.mrf.mxu1  ;;  %2088 = vpow2.f32 %v1725_v52  ;;  %v475_v52 = vadd.f32 %v2434_v8, %v2324_v36 }
0x13d0   :  { %2090 = vpow2.f32 %v1729_v53 }
0x13d1   :  { %v1959_v50 = vpop.f32.mrf.mxu1 }
0x13d5   :  { %v2085_v14 = vpop.eup %2084 }
0x13d6   :  { %1008 = vrot.lane.b32.xlu0 %v2085_v14, %s2159_s10 }
0x13db   :  { %v2087_v51 = vpop.eup %2086 }
0x13dc   :  { %1137 = vrot.lane.b32.xlu1 %v2087_v51, %s2159_s10  ;;  %v2089_v54 = vpop.eup %2088 }
0x13dd   :  { %v999_v11 = vadd.f32 1.0, %v2089_v54  ;;  %v2091_v55 = vpop.eup %2090 }
0x13de   :  { %v1131_v38 = vadd.f32 1.0, %v2091_v55 }
0x13df   :  { %2092 = vrcp.f32 %v999_v11 }
0x13e0   :  { %2094 = vrcp.f32 %v1131_v38 }
0x13ec   :  { %v2093_v56 = vpop.eup %2092 }
0x13ed   :  { %v2095_v59 = vpop.eup %2094  ;;  %v1006_v1 = vmul.f32 %v2093_v56, %v1004_v62 }
0x13ee   :  { %v1135_v6 = vmul.f32 0.0, %v2095_v59 }
0x1448   :  { %v1009_v57 = vpop.permute.xlu0 %1008 }
0x1449   :  { %v1011_v58 = vmul.f32 %v2093_v56, %v1009_v57 }
0x144b   :  { %1013 = vrot.lane.b32.xlu0 %v1011_v58, %s2160_s3 }
0x144e   :  { %v1138_v60 = vpop.permute.xlu1 %1137 }
0x144f   :  { %v1140_v61 = vmul.f32 %v2095_v59, %v1138_v60 }
0x1451   :  { %1142 = vrot.lane.b32.xlu1 %v1140_v61, %s2160_s3 }
0x14bd   :  { %v1014_v4 = vpop.permute.xlu0 %1013 }
0x14be   :  { %v1016_v5 = vadd.f32 %v1014_v4, %v1006_v1 }
0x14c0   :  { %2096 = vtanh.f32 %v1016_v5 }
0x14c3   :  { %v1143_v9 = vpop.permute.xlu1 %1142 }
0x14c4   :  { %v1145_v10 = vadd.f32 %v1143_v9, %v1135_v6 }
0x14c6   :  { %2098 = vtanh.f32 %v1145_v10 }
0x14cd   :  { %v2097_v12 = vpop.eup %2096 }
0x14ce   :  { %1019 = vrot.lane.b32.xlu0 %v2097_v12, %s2159_s10 }
0x14d3   :  { %v2099_v7 = vpop.eup %2098 }
0x14d4   :  { %1148 = vrot.lane.b32.xlu1 %v2099_v7, %s2159_s10  ;;  %v594_v7 = vadd.f32 %v2434_v8, %v2345_v63 }
0x1540   :  { %v1020_v13 = vpop.permute.xlu0 %1019 }
0x1541   :  { %v1022_v15 = vmul.f32 %v2093_v56, %v1020_v13 }
0x1543   :  { %v1023_v16 = vpack.c.bf16 %v1022_v15, %v1022_v15 }
0x1545   :  { %v1025_v17 = vrot.slane %v1023_v16, 3 }
0x1546   :  { %v1149_v18 = vpop.permute.xlu1 %1148 }
0x1547   :  { %v2445_v19 = vmul.f32 %v2095_v59, %v1149_v18  ;;  %1026 = vrot.lane.b32.xlu0 %v1025_v17, %s2160_s3 }
0x1549   :  { %v1152_v20 = vpack.c.bf16 %v2445_v19, %v2445_v19 }
0x154b   :  { %1154 = vrot.lane.b32.xlu1 %v1152_v20, %s2160_s3 }
0x15b9   :  { %v1027_v21 = vpop.permute.xlu0 %1026 }
0x15ba   :  { %1949 = vmatmul.mubr.msk.bf16.vlgmr.msra.gmra.mxu0 %vm108_vm3, %v1027_v21 }
0x15bb   :  { %1961 = vmatpush3.bf16.msra.mxu0 %v2400_v29  ;;  %1964 = vmatprep.mubr.msk.bf16.mxu0 %vm2157_vm1, %v2156_v0 }
0x15bc   :  { %1962 = vmatprep.subr.bf16.mxu0 %v2156_v0 }
0x15bd   :  { %v1155_v22 = vpop.permute.xlu1 %1154 }
0x15bf   :  { %1963 = vmatpush3.bf16.msra.mxu0 %v2408_v34 }
0x15c0   :  { %1976 = vmatprep.subr.bf16.mxu0 %v2156_v0 }
0x15c2   :  { %1965 = vmatmul.mubr.msk.bf16.vlgmr.msra.gmra.mxu0 %vm108_vm3, %v1155_v22 }
0x15c3   :  { %1977 = vmatpush3.bf16.msra.mxu0 %v2400_v29  ;;  %1980 = vmatprep.mubr.msk.bf16.mxu0 %vm2157_vm1, %v2156_v0 }
0x15c4   :  { %1978 = vmatprep.subr.bf16.mxu0 %v2156_v0 }
0x15c7   :  { %1979 = vmatpush3.bf16.msra.mxu0 %v2408_v34 }
0x15c8   :  { %1992 = vmatprep.subr.bf16.mxu0 %v2156_v0 }
0x167a   :  { %v2465_v23 = vpop.f32.mrf.mxu0 }
0x167c   :  { %v1950_v24 = vpop.f32.mrf.mxu0 }
0x167e   :  { %v1068_v25 = vpop.f32.mrf.mxu0 }
0x1680   :  { %v1951_v26 = vpop.f32.mrf.mxu0 }
0x1682   :  { %v1193_v28 = vpop.f32.mrf.mxu0 }
0x1683   :  { %v1199_v30 = vadd.f32 %v1193_v28, %v356_v27 }
0x1684   :  { %v1966_v32 = vpop.f32.mrf.mxu0 }
0x1685   :  { %2100 = vtanh.f32 %v1199_v30  ;;  %v1731_v40 = vmul.f32 -1.442695, %v1199_v30 }
0x1686   :  { %v1196_v35 = vpop.f32.mrf.mxu0 }
0x1687   :  { %2102 = vpow2.f32 %v1731_v40 }
0x1688   :  { %v1967_v37 = vpop.f32.mrf.mxu0 }
0x1692   :  { %v2101_v39 = vpop.eup %2100 }
0x1693   :  { %1209 = vrot.lane.b32.xlu0 %v2101_v39, %s2159_s10 }
0x1694   :  { %v2103_v41 = vpop.eup %2102 }
0x1695   :  { %v1203_v42 = vadd.f32 1.0, %v2103_v41  ;;  %v709_v41 = vadd.f32 %v2434_v8, %v2366_v33 }
0x1697   :  { %2104 = vrcp.f32 %v1203_v42 }
0x16a4   :  { %v2105_v43 = vpop.eup %2104 }
0x16a5   :  { %v1207_v2 = vmul.f32 %v2105_v43, %v1145_v10 }
0x1705   :  { %v1210_v44 = vpop.permute.xlu0 %1209 }
0x1706   :  { %v1212_v45 = vmul.f32 %v2105_v43, %v1210_v44 }
0x1708   :  { %1214 = vrot.lane.b32.xlu1 %v1212_v45, %s2160_s3 }
0x177a   :  { %v1215_v46 = vpop.permute.xlu1 %1214 }
0x177b   :  { %v1217_v47 = vadd.f32 %v1215_v46, %v1207_v2 }
0x177d   :  { %2106 = vtanh.f32 %v1217_v47 }
0x178a   :  { %v2107_v48 = vpop.eup %2106 }
0x178b   :  { %1220 = vrot.lane.b32.xlu0 %v2107_v48, %s2159_s10 }
0x17fd   :  { %v1221_v49 = vpop.permute.xlu0 %1220 }
0x17fe   :  { %v2472_v50 = vmul.f32 %v2105_v43, %v1221_v49 }
0x1800   :  { %v1224_v14 = vpack.c.bf16 %v2472_v50, %v2472_v50 }
0x1802   :  { %1226 = vrot.lane.b32.xlu1 %v1224_v14, %s2160_s3 }
0x1874   :  { %v1227_v51 = vpop.permute.xlu1 %1226 }
0x1875   :  { %1973 = vmatmul.mubr.msk.bf16.vlgmr.msra.gmra.mxu1 %vm108_vm3, %v1227_v51 }
0x1876   :  { %1985 = vmatpush3.bf16.msra.mxu1 %v2400_v29  ;;  %1988 = vmatprep.mubr.msk.bf16.mxu1 %vm2157_vm1, %v2156_v0 }
0x1877   :  { %1986 = vmatprep.subr.bf16.mxu1 %v2156_v0 }
0x187a   :  { %1987 = vmatpush3.bf16.msra.mxu1 %v2408_v34 }
0x187b   :  { %2000 = vmatprep.subr.bf16.mxu1 %v2156_v0 }
0x1935   :  { %v1265_v53 = vpop.f32.mrf.mxu1 }
0x1936   :  { %v1271_v54 = vadd.f32 %v1265_v53, %v475_v52 }
0x1937   :  { %v1974_v11 = vpop.f32.mrf.mxu1 }
0x1938   :  { %2108 = vtanh.f32 %v1271_v54  ;;  %v1733_v57 = vmul.f32 -1.442695, %v1271_v54 }
0x1939   :  { %v1268_v55 = vpop.f32.mrf.mxu1 }
0x193a   :  { %2110 = vpow2.f32 %v1733_v57 }
0x193b   :  { %v1975_v38 = vpop.f32.mrf.mxu1 }
0x1945   :  { %v2109_v56 = vpop.eup %2108 }
0x1946   :  { %1281 = vrot.lane.b32.xlu0 %v2109_v56, %s2159_s10 }
0x1947   :  { %v2111_v58 = vpop.eup %2110 }
0x1948   :  { %v1275_v59 = vadd.f32 1.0, %v2111_v58  ;;  %v828_v58 = vadd.f32 %v2434_v8, %v2387_v3 }
0x194a   :  { %2112 = vrcp.f32 %v1275_v59 }
0x1957   :  { %v2113_v60 = vpop.eup %2112 }
0x1958   :  { %v1279_v36 = vmul.f32 %v2113_v60, %v1217_v47 }
0x19b8   :  { %v1282_v61 = vpop.permute.xlu0 %1281 }
0x19b9   :  { %v1284_v62 = vmul.f32 %v2113_v60, %v1282_v61 }
0x19bb   :  { %1286 = vrot.lane.b32.xlu1 %v1284_v62, %s2160_s3 }
0x1a2d   :  { %v1287_v1 = vpop.permute.xlu1 %1286 }
0x1a2e   :  { %v1289_v4 = vadd.f32 %v1287_v1, %v1279_v36 }
0x1a30   :  { %2114 = vtanh.f32 %v1289_v4 }
0x1a3d   :  { %v2115_v5 = vpop.eup %2114 }
0x1a3e   :  { %1292 = vrot.lane.b32.xlu0 %v2115_v5, %s2159_s10 }
0x1ab0   :  { %v1293_v6 = vpop.permute.xlu0 %1292 }
0x1ab1   :  { %v2489_v9 = vmul.f32 %v2113_v60, %v1293_v6 }
0x1ab3   :  { %v1296_v10 = vpack.c.bf16 %v2489_v9, %v2489_v9 }
0x1ab5   :  { %1298 = vrot.lane.b32.xlu1 %v1296_v10, %s2160_s3 }
0x1b27   :  { %v1299_v12 = vpop.permute.xlu1 %1298 }
0x1b28   :  { %1981 = vmatmul.mubr.msk.bf16.vlgmr.msra.gmra.mxu0 %vm108_vm3, %v1299_v12 }
0x1b29   :  { %1993 = vmatpush3.bf16.msra.mxu0 %v2400_v29  ;;  %1996 = vmatprep.mubr.msk.bf16.mxu0 %vm2157_vm1, %v2156_v0 }
0x1b2a   :  { %1994 = vmatprep.subr.bf16.mxu0 %v2156_v0 }
0x1b2d   :  { %1995 = vmatpush3.bf16.msra.mxu0 %v2408_v34 }
0x1b2e   :  { %2008 = vmatprep.subr.bf16.mxu0 %v2156_v0 }
0x1be8   :  { %v1337_v13 = vpop.f32.mrf.mxu0 }
0x1be9   :  { %v1343_v15 = vadd.f32 %v1337_v13, %v594_v7 }
0x1bea   :  { %v1982_v16 = vpop.f32.mrf.mxu0 }
0x1beb   :  { %2116 = vtanh.f32 %v1343_v15  ;;  %v1735_v21 = vmul.f32 -1.442695, %v1343_v15 }
0x1bec   :  { %v1340_v17 = vpop.f32.mrf.mxu0 }
0x1bed   :  { %2118 = vpow2.f32 %v1735_v21 }
0x1bee   :  { %v1983_v18 = vpop.f32.mrf.mxu0 }
0x1bef   :  { %v947_v18 = vadd.f32 %v2434_v8, %v2428_v31 }
0x1bf8   :  { %v2117_v20 = vpop.eup %2116 }
0x1bf9   :  { %1353 = vrot.lane.b32.xlu0 %v2117_v20, %s2159_s10 }
0x1bfa   :  { %v2119_v22 = vpop.eup %2118 }
0x1bfb   :  { %v1347_v24 = vadd.f32 1.0, %v2119_v22 }
0x1bfd   :  { %2120 = vrcp.f32 %v1347_v24 }
0x1c0a   :  { %v2121_v25 = vpop.eup %2120 }
0x1c0b   :  { %v1351_v63 = vmul.f32 %v2121_v25, %v1289_v4 }
0x1c6b   :  { %v1354_v26 = vpop.permute.xlu0 %1353 }
0x1c6c   :  { %v1356_v27 = vmul.f32 %v2121_v25, %v1354_v26 }
0x1c6e   :  { %1358 = vrot.lane.b32.xlu1 %v1356_v27, %s2160_s3 }
0x1ce0   :  { %v1359_v28 = vpop.permute.xlu1 %1358 }
0x1ce1   :  { %v1361_v30 = vadd.f32 %v1359_v28, %v1351_v63 }
0x1ce3   :  { %2122 = vtanh.f32 %v1361_v30 }
0x1cf0   :  { %v2123_v32 = vpop.eup %2122 }
0x1cf1   :  { %1364 = vrot.lane.b32.xlu0 %v2123_v32, %s2159_s10 }
0x1d63   :  { %v1365_v35 = vpop.permute.xlu0 %1364 }
0x1d64   :  { %v2506_v37 = vmul.f32 %v2121_v25, %v1365_v35 }
0x1d66   :  { %v1368_v39 = vpack.c.bf16 %v2506_v37, %v2506_v37 }
0x1d68   :  { %1370 = vrot.lane.b32.xlu1 %v1368_v39, %s2160_s3 }
0x1dda   :  { %v1371_v40 = vpop.permute.xlu1 %1370 }
0x1ddb   :  { %1989 = vmatmul.mubr.msk.bf16.vlgmr.msra.gmra.mxu1 %vm108_vm3, %v1371_v40 }
0x1ddc   :  { %2001 = vmatpush3.bf16.msra.mxu1 %v2400_v29  ;;  %2004 = vmatprep.mubr.msk.bf16.mxu1 %vm2157_vm1, %v2156_v0 }
0x1ddd   :  { %2002 = vmatprep.subr.bf16.mxu1 %v2156_v0 }
0x1de0   :  { %2003 = vmatpush3.bf16.msra.mxu1 %v2408_v34 }
0x1e9b   :  { %v1409_v42 = vpop.f32.mrf.mxu1 }
0x1e9c   :  { %v1415_v43 = vadd.f32 %v1409_v42, %v709_v41 }
0x1e9d   :  { %v1990_v44 = vpop.f32.mrf.mxu1 }
0x1e9e   :  { %2124 = vtanh.f32 %v1415_v43  ;;  %v1737_v47 = vmul.f32 -1.442695, %v1415_v43 }
0x1e9f   :  { %v1412_v45 = vpop.f32.mrf.mxu1 }
0x1ea0   :  { %2126 = vpow2.f32 %v1737_v47 }
0x1ea1   :  { %v1991_v2 = vpop.f32.mrf.mxu1 }
0x1ea2   :  { %v1066_v2 = vadd.f32 %v2434_v8, %v2465_v23 }
0x1eab   :  { %v2125_v46 = vpop.eup %2124 }
0x1eac   :  { %1425 = vrot.lane.b32.xlu0 %v2125_v46, %s2159_s10 }
0x1ead   :  { %v2127_v48 = vpop.eup %2126 }
0x1eae   :  { %v1419_v49 = vadd.f32 1.0, %v2127_v48 }
0x1eb0   :  { %2128 = vrcp.f32 %v1419_v49 }
0x1ebd   :  { %v2129_v14 = vpop.eup %2128 }
0x1ebe   :  { %v1423_v33 = vmul.f32 %v2129_v14, %v1361_v30 }
0x1f1e   :  { %v1426_v51 = vpop.permute.xlu0 %1425 }
0x1f1f   :  { %v1428_v52 = vmul.f32 %v2129_v14, %v1426_v51 }
0x1f21   :  { %1430 = vrot.lane.b32.xlu1 %v1428_v52, %s2160_s3 }
0x1f93   :  { %v1431_v53 = vpop.permute.xlu1 %1430 }
0x1f94   :  { %v1433_v54 = vadd.f32 %v1431_v53, %v1423_v33 }
0x1f96   :  { %2130 = vtanh.f32 %v1433_v54 }
0x1fa3   :  { %v2131_v11 = vpop.eup %2130 }
0x1fa4   :  { %1436 = vrot.lane.b32.xlu0 %v2131_v11, %s2159_s10 }
0x2016   :  { %v1437_v55 = vpop.permute.xlu0 %1436 }
0x2017   :  { %v2522_v38 = vmul.f32 %v2129_v14, %v1437_v55 }
0x2019   :  { %v1440_v56 = vpack.c.bf16 %v2522_v38, %v2522_v38 }
0x201b   :  { %1442 = vrot.lane.b32.xlu1 %v1440_v56, %s2160_s3 }
0x208d   :  { %v1443_v57 = vpop.permute.xlu1 %1442 }
0x208e   :  { %1997 = vmatmul.mubr.msk.bf16.vlgmr.msra.gmra.mxu0 %vm108_vm3, %v1443_v57 }
0x208f   :  { %2009 = vmatpush3.bf16.msra.mxu0 %v2400_v29  ;;  %2012 = vmatprep.mubr.msk.bf16.mxu0 %vm2157_vm1, %v2156_v0 }
0x2090   :  { %2010 = vmatprep.subr.bf16.mxu0 %v2156_v0 }
0x2093   :  { %2011 = vmatpush3.bf16.msra.mxu0 %v2408_v34 }
0x214e   :  { %v1481_v59 = vpop.f32.mrf.mxu0 }
0x214f   :  { %v1487_v60 = vadd.f32 %v1481_v59, %v828_v58 }
0x2150   :  { %v1998_v61 = vpop.f32.mrf.mxu0 }
0x2151   :  { %2132 = vtanh.f32 %v1487_v60  ;;  %v1739_v29 = vmul.f32 -1.442695, %v1487_v60 }
0x2152   :  { %v1484_v62 = vpop.f32.mrf.mxu0 }
0x2153   :  { %2134 = vpow2.f32 %v1739_v29 }
0x2154   :  { %v1999_v36 = vpop.f32.mrf.mxu0 }
0x215e   :  { %v2133_v1 = vpop.eup %2132 }
0x215f   :  { %1497 = vrot.lane.b32.xlu0 %v2133_v1, %s2159_s10 }
0x2160   :  { %v2135_v4 = vpop.eup %2134 }
0x2161   :  { %v1491_v5 = vadd.f32 1.0, %v2135_v4 }
0x2163   :  { %2136 = vrcp.f32 %v1491_v5 }
0x2170   :  { %v2137_v0 = vpop.eup %2136 }
0x2171   :  { %v1495_v3 = vmul.f32 %v2137_v0, %v1433_v54 }
0x21d1   :  { %v1498_v6 = vpop.permute.xlu0 %1497 }
0x21d2   :  { %v1500_v34 = vmul.f32 %v2137_v0, %v1498_v6 }
0x21d4   :  { %1502 = vrot.lane.b32.xlu1 %v1500_v34, %s2160_s3 }
0x2246   :  { %v1503_v10 = vpop.permute.xlu1 %1502 }
0x2247   :  { %v1505_v12 = vadd.f32 %v1503_v10, %v1495_v3 }
0x2249   :  { %2138 = vtanh.f32 %v1505_v12 }
0x2256   :  { %v2139_v7 = vpop.eup %2138 }
0x2257   :  { %1508 = vrot.lane.b32.xlu0 %v2139_v7, %s2159_s10 }
0x22c9   :  { %v1509_v13 = vpop.permute.xlu0 %1508 }
0x22ca   :  { %v1511_v15 = vmul.f32 %v2137_v0, %v1509_v13 }
0x22cc   :  { %v1512_v16 = vpack.c.bf16 %v1511_v15, %v1511_v15 }
0x22ce   :  { %1514 = vrot.lane.b32.xlu1 %v1512_v16, %s2160_s3 }
0x2340   :  { %v1515_v17 = vpop.permute.xlu1 %1514 }
0x2341   :  { %2005 = vmatmul.mubr.msk.bf16.vlgmr.msra.gmra.mxu1 %vm108_vm3, %v1515_v17 }
0x2401   :  { %v1553_v20 = vpop.f32.mrf.mxu1 }
0x2402   :  { %v1559_v21 = vadd.f32 %v1553_v20, %v947_v18 }
0x2403   :  { %v2006_v22 = vpop.f32.mrf.mxu1 }
0x2404   :  { %2140 = vtanh.f32 %v1559_v21  ;;  %v1741_v27 = vmul.f32 -1.442695, %v1559_v21 }
0x2405   :  { %v1556_v24 = vpop.f32.mrf.mxu1 }
0x2406   :  { %2142 = vpow2.f32 %v1741_v27 }
0x2407   :  { %v2007_v25 = vpop.f32.mrf.mxu1 }
0x2411   :  { %v2141_v26 = vpop.eup %2140 }
0x2412   :  { %1569 = vrot.lane.b32.xlu0 %v2141_v26, %s2159_s10 }
0x2413   :  { %v2143_v63 = vpop.eup %2142 }
0x2414   :  { %v1563_v28 = vadd.f32 1.0, %v2143_v63 }
0x2416   :  { %2144 = vrcp.f32 %v1563_v28 }
0x2423   :  { %v2145_v30 = vpop.eup %2144 }
0x2424   :  { %v1567_v31 = vmul.f32 %v2145_v30, %v1505_v12 }
0x2484   :  { %v1570_v32 = vpop.permute.xlu0 %1569 }
0x2485   :  { %v1572_v35 = vmul.f32 %v2145_v30, %v1570_v32 }
0x2487   :  { %1574 = vrot.lane.b32.xlu1 %v1572_v35, %s2160_s3 }
0x24f9   :  { %v1575_v39 = vpop.permute.xlu1 %1574 }
0x24fa   :  { %v1577_v40 = vadd.f32 %v1575_v39, %v1567_v31 }
0x24fc   :  { %2146 = vtanh.f32 %v1577_v40 }
0x2509   :  { %v2147_v41 = vpop.eup %2146 }
0x250a   :  { %1580 = vrot.lane.b32.xlu0 %v2147_v41, %s2159_s10 }
0x257c   :  { %v1581_v42 = vpop.permute.xlu0 %1580 }
0x257d   :  { %v1583_v43 = vmul.f32 %v2145_v30, %v1581_v42 }
0x257f   :  { %v1584_v44 = vpack.c.bf16 %v1583_v43, %v1583_v43 }
0x2581   :  { %1586 = vrot.lane.b32.xlu1 %v1584_v44, %s2160_s3 }
0x25f3   :  { %v1587_v45 = vpop.permute.xlu1 %1586 }
0x25f4   :  { %2013 = vmatmul.mubr.msk.bf16.vlgmr.msra.gmra.mxu0 %vm108_vm3, %v1587_v45 }
0x26b4   :  { %v1625_v46 = vpop.f32.mrf.mxu0 }
0x26b5   :  { %v1631_v47 = vadd.f32 %v1625_v46, %v1066_v2 }
0x26b6   :  { %v2014_v48 = vpop.f32.mrf.mxu0 }
0x26b7   :  { %2148 = vtanh.f32 %v1631_v47  ;;  %v1743_v52 = vmul.f32 -1.442695, %v1631_v47 }
0x26b8   :  { %v1628_v49 = vpop.f32.mrf.mxu0 }
0x26b9   :  { %2150 = vpow2.f32 %v1743_v52 }
0x26ba   :  { %v2015_v14 = vpop.f32.mrf.mxu0 }
0x26c4   :  { %v2149_v51 = vpop.eup %2148 }
0x26c5   :  { %1641 = vrot.lane.b32.xlu0 %v2149_v51, %s2159_s10 }
0x26c6   :  { %v2151_v33 = vpop.eup %2150 }
0x26c7   :  { %v1635_v53 = vadd.f32 1.0, %v2151_v33 }
0x26c9   :  { %1678 = vrot.lane.b32.xlu0 %v1511_v15, %s2159_s10  ;;  %2152 = vrcp.f32 %v1635_v53 }
0x26cd   :  { %1657 = vrot.lane.b32.xlu0 %v2445_v19, %s2160_s3 }
0x26d6   :  { %v2153_v8 = vpop.eup %2152 }
0x26d7   :  { %v1639_v11 = vmul.f32 %v2153_v8, %v1577_v40 }
0x2737   :  { %v1642_v23 = vpop.permute.xlu0 %1641 }
0x2738   :  { %v1644_v54 = vmul.f32 %v2153_v8, %v1642_v23 }
0x273a   :  { %1646 = vrot.lane.b32.xlu1 %v1644_v54, %s2160_s3 }
0x273b   :  { %v1679_v58 = vpop.permute.xlu0 %1678 }
0x273e   :  { %1674 = vrot.lane.b32.xlu1 %v2522_v38, %s2160_s3 }
0x273f   :  { %v1658_v60 = vpop.permute.xlu0 %1657 }
0x2742   :  { %1682 = vrot.lane.b32.xlu1 %v1583_v43, %s2161_s6 }
0x2746   :  { %1661 = vrot.lane.b32.xlu1 %v2472_v50, %s2159_s10 }
0x27ac   :  { %v1647_v19 = vpop.permute.xlu1 %1646 }
0x27ad   :  { %v1649_v55 = vadd.f32 %v1647_v19, %v1639_v11 }
0x27af   :  { %2154 = vtanh.f32 %v1649_v55 }
0x27b0   :  { %v1675_v57 = vpop.permute.xlu1 %1674 }
0x27b1   :  { %v1685_v61 = vsel %vm108_vm3, %v1675_v57, %v1679_v58 }
0x27b4   :  { %v1683_v59 = vpop.permute.xlu1 %1682 }
0x27b5   :  { %v1686_v36 = vsel %vm1669_vm4, %v1685_v61, %v1683_v59 }
0x27b8   :  { %v1662_v62 = vpop.permute.xlu1 %1661 }
0x27b9   :  { %v1668_v29 = vsel %vm108_vm3, %v1658_v60, %v1662_v62 }
0x27bc   :  { %v2155_v56 = vpop.eup %2154 }
0x27bd   :  { %1652 = vrot.lane.b32.xlu0 %v2155_v56, %s2159_s10 }
0x27c1   :  { %1665 = vrot.lane.b32.xlu0 %v2489_v9, %s2161_s6 }
0x282f   :  { %v1653_v38 = vpop.permute.xlu0 %1652 }
0x2830   :  { %v1655_v50 = vmul.f32 %v2153_v8, %v1653_v38 }
0x2832   :  { %v1687_v1 = vsel %vm1671_vm5, %v1686_v36, %v1655_v50 }
0x2833   :  { %v1689_v4 = vrot.slane %v1687_v1, 6  ;;  %v1666_v5 = vpop.permute.xlu0 %1665 }
0x2834   :  { %v1670_v0 = vsel %vm1669_vm4, %v1668_v29, %v1666_v5 }
0x2835   :  { %v1672_v9 = vsel %vm1671_vm5, %v1670_v0, %v2506_v37 }
0x2836   :  { %v1691_v6 = vsel %vm42_vm0, %v1672_v9, %v1689_v4 }
0x2837   :  { %1692 = vst [vmem:[%s2574_s7] sm:$0xf] %v1691_v6 }

</bundles_post_ra>
